<compile_context>
chip_gen: v7x
topology: tpu7x:2x2x1
jax: 0.10.0
libtpu: 0.0.40
codegen_flags: <defaults>
</compile_context>

<pallas_src>
import jax
import jax.numpy as jnp
import numpy as np
from jax.experimental import pallas as pl
from jax.experimental.pallas import tpu as pltpu

EPS = 1e-5


def basic_block_kernel(x_ref, w1_ref, s1_ref, w2_ref, s2_ref, out_ref, ypad_ref):
    """Fused conv3x3 -> BN -> ReLU -> conv3x3 -> BN -> +residual -> ReLU.

    B images per grid step, stacked along the sublane axis with per-image
    zero halo rows; W and C are folded into the lane axis.

      x_ref   : (B*(H+2), W*C)   bf16  row-padded, stacked input (halo rows zero)
      w1_ref  : (3*W*C, W*C)     bf16  conv1 weights, BN1 scale + kw/pad + kh folded
      s1_ref  : (1, W*C)         f32   BN1 shift (tiled over W)
      w2_ref  : (3*W*C, W*C)     bf16  conv2 weights, BN2 scale + kw/pad + kh folded
      s2_ref  : (1, W*C)         f32   BN2 shift (tiled over W)
      out_ref : (B, H, W*C)      f32
      ypad_ref: (B*(H+2), W*C)   bf16  scratch: row-padded conv2 input (stacked)
    """
    Mp, WC = x_ref.shape
    B, H, _ = out_ref.shape
    Hp = H + 2
    M = Mp - 2
    assert Mp == B * Hp

    # ---- conv1 + bn1 (scale folded into weights): one MXU dot, K = 3*WC ------
    xb = x_ref[...]                                   # bf16, cast done wrapper-side
    lhs1 = jnp.concatenate([xb[0:M, :], xb[1:M + 1, :], xb[2:Mp, :]], axis=1)
    acc1 = jnp.dot(lhs1, w1_ref[...], preferred_element_type=jnp.float32)
    y1 = jnp.maximum(acc1 + s1_ref[...], 0.0)         # (M, WC) f32, ReLU fused

    # ---- stage conv2 input (bf16) with per-image zero halo rows --------------
    # The big store covers stacked positions 1..Mp-2; rows that sit on an image
    # boundary received cross-image junk, so overwrite them with zeros.
    ypad_ref[1:Mp - 1, :] = y1.astype(jnp.bfloat16)
    zrow1 = jnp.zeros((1, WC), jnp.bfloat16)
    zrow2 = jnp.zeros((2, WC), jnp.bfloat16)
    ypad_ref[0:1, :] = zrow1                            # image 0 top halo
    ypad_ref[Mp - 1:Mp, :] = zrow1                      # image B-1 bottom halo
    for i in range(1, B):                               # inter-image halo pairs
        ypad_ref[i * Hp - 1:i * Hp + 1, :] = zrow2

    # ---- conv2 + bn2: one MXU dot, K = 3*WC ----------------------------------
    yb = ypad_ref[...]
    lhs2 = jnp.concatenate([yb[0:M, :], yb[1:M + 1, :], yb[2:Mp, :]], axis=1)
    acc2 = jnp.dot(lhs2, w2_ref[...], preferred_element_type=jnp.float32)

    # ---- residual + shift + relu over the whole stack ------------------------
    # Rows at halo positions hold junk but are never written back.
    res = x_ref[1:Mp - 1, :].astype(jnp.float32)
    z = jnp.maximum(acc2 + s2_ref[...] + res, 0.0)      # (M, WC) f32

    # ---- write back only the interior rows of each image ---------------------
    for i in range(B):
        base = i * Hp
        out_ref[i, :, :] = z[base:base + H, :]


def _fold_conv_weight(w_hwio, W):
    """(3, 3, Cin, Cout) -> (3, W*Cin, W*Cout) block-banded weight.

    Folds the kw taps and the left/right zero padding of a stride-1, pad-1
    3x3 conv into the contraction, so one dot produces a full lane-dense
    output row: out[h, wo*Cout+co] = sum_kh x_row[h+kh] @ big[kh].
    """
    KH, KW, Cin, Cout = w_hwio.shape
    sel = np.zeros((KW, W, W), np.float32)              # (kw, w_in, w_out)
    for kw in range(KW):
        for wo in range(W):
            wi = wo + kw - 1                             # padding = 1
            if 0 <= wi < W:
                sel[kw, wi, wo] = 1.0
    big = jnp.einsum('kio,hkcd->hicod', jnp.asarray(sel),
                     w_hwio.astype(jnp.float32))
    return big.reshape(KH, W * Cin, W * Cout)


def _pick_block_batch(N, H):
    """Largest divisor B of N with B*(H+2) <= 256 rows per block (MXU M target)."""
    Hp = H + 2
    best = 1
    for d in range(1, N + 1):
        if N % d == 0 and d * Hp <= 256:
            best = d
    return best


def basic_block_forward(x_nchw, params):
    """x_nchw: (N, C, H, W) float32 — PyTorch-convention input."""
    (w1, g1, b1, m1, v1, w2, g2, b2, m2, v2) = params
    N, C, H, W = x_nchw.shape
    Cout = w1.shape[-1]
    assert C == Cout, "default BasicBlock (stride=1, no downsample) needs inplanes == planes"
    WC = W * Cout
    # Best perf when W*C is a multiple of 128 (lane-dense stores / MXU lanes).

    B = _pick_block_batch(N, H)
    G = N // B
    Hp = H + 2
    Mp = B * Hp

    # ---- fold BatchNorm (inference form) into the conv weights --------------
    scale1 = g1 * jax.lax.rsqrt(v1 + EPS)
    shift1 = b1 - m1 * scale1
    scale2 = g2 * jax.lax.rsqrt(v2 + EPS)
    shift2 = b2 - m2 * scale2

    # kh taps stacked onto the contraction axis: (3, WC, WC) -> (3*WC, WC).
    big_w1 = _fold_conv_weight(w1 * scale1, W).reshape(3 * WC, WC).astype(jnp.bfloat16)
    big_w2 = _fold_conv_weight(w2 * scale2, W).reshape(3 * WC, WC).astype(jnp.bfloat16)
    s1 = jnp.tile(shift1.astype(jnp.float32), W).reshape(1, WC)
    s2 = jnp.tile(shift2.astype(jnp.float32), W).reshape(1, WC)

    # ---- NHWC, fold (W,C) into the lane axis, bf16, pad H rows, stack B -----
    x_lane = jnp.transpose(x_nchw, (0, 2, 3, 1)).reshape(N, H, WC).astype(jnp.bfloat16)
    x_pad = jnp.pad(x_lane, ((0, 0), (1, 1), (0, 0)))          # (N, H+2, WC)
    x_stack = x_pad.reshape(G, Mp, WC)                          # B images per block

    out = pl.pallas_call(
        basic_block_kernel,
        out_shape=jax.ShapeDtypeStruct((N, H, WC), jnp.float32),
        grid=(G,),
        in_specs=[
            pl.BlockSpec((None, Mp, WC), lambda g: (g, 0, 0)),   # stacked images
            pl.BlockSpec((3 * WC, WC), lambda g: (0, 0)),        # conv1 weights (resident)
            pl.BlockSpec((1, WC), lambda g: (0, 0)),             # bn1 shift
            pl.BlockSpec((3 * WC, WC), lambda g: (0, 0)),        # conv2 weights (resident)
            pl.BlockSpec((1, WC), lambda g: (0, 0)),             # bn2 shift
        ],
        out_specs=pl.BlockSpec((B, H, WC), lambda g: (g, 0, 0)),
        scratch_shapes=[pltpu.VMEM((Mp, WC), jnp.bfloat16)],
        compiler_params=pltpu.CompilerParams(
            dimension_semantics=("parallel",),
            vmem_limit_bytes=32 * 1024 * 1024),
    )(x_stack, big_w1, s1, big_w2, s2)

    return jnp.transpose(out.reshape(N, H, W, Cout), (0, 3, 1, 2))


def reference_forward(x_nchw, params):
    """Pure-JAX f32 reference (lax.conv) for correctness checking."""
    (w1, g1, b1, m1, v1, w2, g2, b2, m2, v2) = params
    x = jnp.transpose(x_nchw, (0, 2, 3, 1)).astype(jnp.float32)

    def conv(inp, w):
        return jax.lax.conv_general_dilated(
            inp, w, window_strides=(1, 1), padding='SAME',
            dimension_numbers=('NHWC', 'HWIO', 'NHWC'),
            precision=jax.lax.Precision.HIGHEST)

    def bn(inp, g, b, m, v):
        s = g * jax.lax.rsqrt(v + EPS)
        return inp * s + (b - m * s)

    out = jax.nn.relu(bn(conv(x, w1), g1, b1, m1, v1))
    out = bn(conv(out, w2), g2, b2, m2, v2)
    out = jax.nn.relu(out + x)
    return jnp.transpose(out, (0, 3, 1, 2))


def init_params(key, inplanes, planes):
    ks = jax.random.split(key, 8)
    fan1 = inplanes * 9
    fan2 = planes * 9
    w1 = jax.random.normal(ks[0], (3, 3, inplanes, planes), jnp.float32) * (2.0 / fan1) ** 0.5
    w2 = jax.random.normal(ks[1], (3, 3, planes, planes), jnp.float32) * (2.0 / fan2) ** 0.5
    g1 = 1.0 + 0.1 * jax.random.normal(ks[2], (planes,), jnp.float32)
    b1 = 0.1 * jax.random.normal(ks[3], (planes,), jnp.float32)
    m1 = 0.1 * jax.random.normal(ks[4], (planes,), jnp.float32)
    v1 = 1.0 + 0.1 * jnp.abs(jax.random.normal(ks[5], (planes,), jnp.float32))
    g2 = 1.0 + 0.1 * jax.random.normal(ks[6], (planes,), jnp.float32)
    b2 = 0.1 * jax.random.normal(ks[7], (planes,), jnp.float32)
    m2 = jnp.zeros((planes,), jnp.float32)
    v2 = jnp.ones((planes,), jnp.float32)
    return (w1, g1, b1, m1, v1, w2, g2, b2, m2, v2)


if __name__ == "__main__":
    # N=16 so the batched-block kernel runs with B=8 images per grid step
    # (M = 8*18 - 2 = 142 MXU rows) and a 2-step "parallel" grid; W*C = 128.
    N, C, H, W = 16, 8, 16, 16      # inplanes == planes == 8, stride 1
    key = jax.random.PRNGKey(0)
    k_x, k_p = jax.random.split(key)
    x = jax.random.normal(k_x, (N, C, H, W), jnp.float32)
    params = init_params(k_p, C, C)

    fwd = jax.jit(basic_block_forward)
    out = jax.block_until_ready(fwd(x, params))

    ref = jax.block_until_ready(reference_forward(x, params))
    # Tolerance sized for the bf16 activation/weight MXU path vs f32 HIGHEST ref.
    np.testing.assert_allclose(np.asarray(out), np.asarray(ref), rtol=5e-2, atol=5e-2)

    print("KERNEL_OK")
</pallas_src>

<mosaic_0001>
module attributes {stable_mosaic.version = 11 : i64} {
  func.func @basic_block_kernel(%arg0: i32, %arg1: memref<1x144x128xbf16, #tpu.memory_space<vmem>>, %arg2: memref<384x128xbf16, #tpu.memory_space<vmem>>, %arg3: memref<1x128xf32, #tpu.memory_space<vmem>>, %arg4: memref<384x128xbf16, #tpu.memory_space<vmem>>, %arg5: memref<1x128xf32, #tpu.memory_space<vmem>>, %arg6: memref<8x16x128xf32, #tpu.memory_space<vmem>>, %arg7: memref<144x128xbf16, #tpu.memory_space<vmem>>) attributes {dimension_semantics = [#tpu.dimension_semantics<parallel>], iteration_bounds = array<i64: 2>, scalar_prefetch = 0 : i64, scratch_operands = 1 : i64, tpu.core_type = #tpu.core_type<tc>, window_params = [{transform_indices = @transform_0, window_bounds = array<i64: 1, 144, 128>}, {pipeline_mode = #tpu.pipeline_mode<synchronous>, transform_indices = @transform_1, window_bounds = array<i64: 384, 128>}, {pipeline_mode = #tpu.pipeline_mode<synchronous>, transform_indices = @transform_2, window_bounds = array<i64: 1, 128>}, {pipeline_mode = #tpu.pipeline_mode<synchronous>, transform_indices = @transform_3, window_bounds = array<i64: 384, 128>}, {pipeline_mode = #tpu.pipeline_mode<synchronous>, transform_indices = @transform_4, window_bounds = array<i64: 1, 128>}, {transform_indices = @transform_5, window_bounds = array<i64: 8, 16, 128>}]} {
    %c0 = arith.constant 0 : index
    %c0_0 = arith.constant 0 : index
    %c0_1 = arith.constant 0 : index
    %0 = vector.load %arg1[%c0, %c0_0, %c0_1] : memref<1x144x128xbf16, #tpu.memory_space<vmem>>, vector<1x144x128xbf16>
    %1 = vector.shape_cast %0 : vector<1x144x128xbf16> to vector<144x128xbf16>
    %2 = vector.extract_strided_slice %1 {offsets = [0, 0], sizes = [142, 128], strides = [1, 1]} : vector<144x128xbf16> to vector<142x128xbf16>
    %3 = vector.extract_strided_slice %1 {offsets = [1, 0], sizes = [142, 128], strides = [1, 1]} : vector<144x128xbf16> to vector<142x128xbf16>
    %4 = vector.extract_strided_slice %1 {offsets = [2, 0], sizes = [142, 128], strides = [1, 1]} : vector<144x128xbf16> to vector<142x128xbf16>
    %5 = tpu.concatenate %2, %3, %4 in 1 : vector<142x128xbf16>, vector<142x128xbf16>, vector<142x128xbf16> -> vector<142x384xbf16>
    %c0_2 = arith.constant 0 : index
    %c0_3 = arith.constant 0 : index
    %6 = vector.load %arg2[%c0_2, %c0_3] : memref<384x128xbf16, #tpu.memory_space<vmem>>, vector<384x128xbf16>
    %cst = arith.constant dense<0.000000e+00> : vector<142x128xf32>
    %7 = tpu.matmul %5, %6, %cst {dimension_numbers = #tpu.dot_dimension_numbers<[1], [0], [0], [1], [0, 0, 1, 1], [], []>} : vector<142x384xbf16>, vector<384x128xbf16>, vector<142x128xf32> -> vector<142x128xf32>
    %c0_4 = arith.constant 0 : index
    %c0_5 = arith.constant 0 : index
    %8 = vector.load %arg3[%c0_4, %c0_5] : memref<1x128xf32, #tpu.memory_space<vmem>>, vector<1x128xf32>
    %9 = vector.broadcast %8 : vector<1x128xf32> to vector<142x128xf32>
    %10 = arith.addf %7, %9 : vector<142x128xf32>
    %cst_6 = arith.constant 0.000000e+00 : f32
    %11 = vector.broadcast %cst_6 : f32 to vector<142x128xf32>
    %12 = arith.maximumf %10, %11 : vector<142x128xf32>
    %13 = arith.truncf %12 : vector<142x128xf32> to vector<142x128xbf16>
    %c1 = arith.constant 1 : index
    %c0_7 = arith.constant 0 : index
    %14 = vector.load %arg7[%c1, %c0_7] : memref<144x128xbf16, #tpu.memory_space<vmem>>, vector<142x128xbf16>
    tpu.vector_store %arg7[%c1, %c0_7], %13 {strides = array<i32>} : memref<144x128xbf16, #tpu.memory_space<vmem>>, vector<142x128xbf16>,
    %cst_8 = arith.constant 0.000000e+00 : bf16
    %15 = vector.broadcast %cst_8 : bf16 to vector<1x128xbf16>
    %cst_9 = arith.constant 0.000000e+00 : bf16
    %16 = vector.broadcast %cst_9 : bf16 to vector<2x128xbf16>
    %c0_10 = arith.constant 0 : index
    %c0_11 = arith.constant 0 : index
    %17 = vector.load %arg7[%c0_10, %c0_11] : memref<144x128xbf16, #tpu.memory_space<vmem>>, vector<1x128xbf16>
    tpu.vector_store %arg7[%c0_10, %c0_11], %15 {strides = array<i32>} : memref<144x128xbf16, #tpu.memory_space<vmem>>, vector<1x128xbf16>,
    %c143 = arith.constant 143 : index
    %c0_12 = arith.constant 0 : index
    %18 = vector.load %arg7[%c143, %c0_12] : memref<144x128xbf16, #tpu.memory_space<vmem>>, vector<1x128xbf16>
    tpu.vector_store %arg7[%c143, %c0_12], %15 {strides = array<i32>} : memref<144x128xbf16, #tpu.memory_space<vmem>>, vector<1x128xbf16>,
    %c17 = arith.constant 17 : index
    %c0_13 = arith.constant 0 : index
    %19 = vector.load %arg7[%c17, %c0_13] : memref<144x128xbf16, #tpu.memory_space<vmem>>, vector<2x128xbf16>
    tpu.vector_store %arg7[%c17, %c0_13], %16 {strides = array<i32>} : memref<144x128xbf16, #tpu.memory_space<vmem>>, vector<2x128xbf16>,
    %c35 = arith.constant 35 : index
    %c0_14 = arith.constant 0 : index
    %20 = vector.load %arg7[%c35, %c0_14] : memref<144x128xbf16, #tpu.memory_space<vmem>>, vector<2x128xbf16>
    tpu.vector_store %arg7[%c35, %c0_14], %16 {strides = array<i32>} : memref<144x128xbf16, #tpu.memory_space<vmem>>, vector<2x128xbf16>,
    %c53 = arith.constant 53 : index
    %c0_15 = arith.constant 0 : index
    %21 = vector.load %arg7[%c53, %c0_15] : memref<144x128xbf16, #tpu.memory_space<vmem>>, vector<2x128xbf16>
    tpu.vector_store %arg7[%c53, %c0_15], %16 {strides = array<i32>} : memref<144x128xbf16, #tpu.memory_space<vmem>>, vector<2x128xbf16>,
    %c71 = arith.constant 71 : index
    %c0_16 = arith.constant 0 : index
    %22 = vector.load %arg7[%c71, %c0_16] : memref<144x128xbf16, #tpu.memory_space<vmem>>, vector<2x128xbf16>
    tpu.vector_store %arg7[%c71, %c0_16], %16 {strides = array<i32>} : memref<144x128xbf16, #tpu.memory_space<vmem>>, vector<2x128xbf16>,
    %c89 = arith.constant 89 : index
    %c0_17 = arith.constant 0 : index
    %23 = vector.load %arg7[%c89, %c0_17] : memref<144x128xbf16, #tpu.memory_space<vmem>>, vector<2x128xbf16>
    tpu.vector_store %arg7[%c89, %c0_17], %16 {strides = array<i32>} : memref<144x128xbf16, #tpu.memory_space<vmem>>, vector<2x128xbf16>,
    %c107 = arith.constant 107 : index
    %c0_18 = arith.constant 0 : index
    %24 = vector.load %arg7[%c107, %c0_18] : memref<144x128xbf16, #tpu.memory_space<vmem>>, vector<2x128xbf16>
    tpu.vector_store %arg7[%c107, %c0_18], %16 {strides = array<i32>} : memref<144x128xbf16, #tpu.memory_space<vmem>>, vector<2x128xbf16>,
    %c125 = arith.constant 125 : index
    %c0_19 = arith.constant 0 : index
    %25 = vector.load %arg7[%c125, %c0_19] : memref<144x128xbf16, #tpu.memory_space<vmem>>, vector<2x128xbf16>
    tpu.vector_store %arg7[%c125, %c0_19], %16 {strides = array<i32>} : memref<144x128xbf16, #tpu.memory_space<vmem>>, vector<2x128xbf16>,
    %c0_20 = arith.constant 0 : index
    %c0_21 = arith.constant 0 : index
    %26 = vector.load %arg7[%c0_20, %c0_21] : memref<144x128xbf16, #tpu.memory_space<vmem>>, vector<144x128xbf16>
    %27 = vector.extract_strided_slice %26 {offsets = [0, 0], sizes = [142, 128], strides = [1, 1]} : vector<144x128xbf16> to vector<142x128xbf16>
    %28 = vector.extract_strided_slice %26 {offsets = [1, 0], sizes = [142, 128], strides = [1, 1]} : vector<144x128xbf16> to vector<142x128xbf16>
    %29 = vector.extract_strided_slice %26 {offsets = [2, 0], sizes = [142, 128], strides = [1, 1]} : vector<144x128xbf16> to vector<142x128xbf16>
    %30 = tpu.concatenate %27, %28, %29 in 1 : vector<142x128xbf16>, vector<142x128xbf16>, vector<142x128xbf16> -> vector<142x384xbf16>
    %c0_22 = arith.constant 0 : index
    %c0_23 = arith.constant 0 : index
    %31 = vector.load %arg4[%c0_22, %c0_23] : memref<384x128xbf16, #tpu.memory_space<vmem>>, vector<384x128xbf16>
    %cst_24 = arith.constant dense<0.000000e+00> : vector<142x128xf32>
    %32 = tpu.matmul %30, %31, %cst_24 {dimension_numbers = #tpu.dot_dimension_numbers<[1], [0], [0], [1], [0, 0, 1, 1], [], []>} : vector<142x384xbf16>, vector<384x128xbf16>, vector<142x128xf32> -> vector<142x128xf32>
    %c0_25 = arith.constant 0 : index
    %c1_26 = arith.constant 1 : index
    %c0_27 = arith.constant 0 : index
    %33 = vector.load %arg1[%c0_25, %c1_26, %c0_27] : memref<1x144x128xbf16, #tpu.memory_space<vmem>>, vector<1x142x128xbf16>
    %34 = vector.shape_cast %33 : vector<1x142x128xbf16> to vector<142x128xbf16>
    %35 = arith.extf %34 : vector<142x128xbf16> to vector<142x128xf32>
    %c0_28 = arith.constant 0 : index
    %c0_29 = arith.constant 0 : index
    %36 = vector.load %arg5[%c0_28, %c0_29] : memref<1x128xf32, #tpu.memory_space<vmem>>, vector<1x128xf32>
    %37 = vector.broadcast %36 : vector<1x128xf32> to vector<142x128xf32>
    %38 = arith.addf %32, %37 : vector<142x128xf32>
    %39 = arith.addf %38, %35 : vector<142x128xf32>
    %cst_30 = arith.constant 0.000000e+00 : f32
    %40 = vector.broadcast %cst_30 : f32 to vector<142x128xf32>
    %41 = arith.maximumf %39, %40 : vector<142x128xf32>
    %42 = vector.extract_strided_slice %41 {offsets = [0, 0], sizes = [16, 128], strides = [1, 1]} : vector<142x128xf32> to vector<16x128xf32>
    %c0_31 = arith.constant 0 : index
    %c0_32 = arith.constant 0 : index
    %c0_33 = arith.constant 0 : index
    %43 = vector.load %arg6[%c0_31, %c0_32, %c0_33] : memref<8x16x128xf32, #tpu.memory_space<vmem>>, vector<1x16x128xf32>
    %44 = vector.shape_cast %43 : vector<1x16x128xf32> to vector<16x128xf32>
    %45 = vector.shape_cast %42 : vector<16x128xf32> to vector<1x16x128xf32>
    tpu.vector_store %arg6[%c0_31, %c0_32, %c0_33], %45 {strides = array<i32>} : memref<8x16x128xf32, #tpu.memory_space<vmem>>, vector<1x16x128xf32>,
    %46 = vector.extract_strided_slice %41 {offsets = [18, 0], sizes = [16, 128], strides = [1, 1]} : vector<142x128xf32> to vector<16x128xf32>
    %c1_34 = arith.constant 1 : index
    %c0_35 = arith.constant 0 : index
    %c0_36 = arith.constant 0 : index
    %47 = vector.load %arg6[%c1_34, %c0_35, %c0_36] : memref<8x16x128xf32, #tpu.memory_space<vmem>>, vector<1x16x128xf32>
    %48 = vector.shape_cast %47 : vector<1x16x128xf32> to vector<16x128xf32>
    %49 = vector.shape_cast %46 : vector<16x128xf32> to vector<1x16x128xf32>
    tpu.vector_store %arg6[%c1_34, %c0_35, %c0_36], %49 {strides = array<i32>} : memref<8x16x128xf32, #tpu.memory_space<vmem>>, vector<1x16x128xf32>,
    %50 = vector.extract_strided_slice %41 {offsets = [36, 0], sizes = [16, 128], strides = [1, 1]} : vector<142x128xf32> to vector<16x128xf32>
    %c2 = arith.constant 2 : index
    %c0_37 = arith.constant 0 : index
    %c0_38 = arith.constant 0 : index
    %51 = vector.load %arg6[%c2, %c0_37, %c0_38] : memref<8x16x128xf32, #tpu.memory_space<vmem>>, vector<1x16x128xf32>
    %52 = vector.shape_cast %51 : vector<1x16x128xf32> to vector<16x128xf32>
    %53 = vector.shape_cast %50 : vector<16x128xf32> to vector<1x16x128xf32>
    tpu.vector_store %arg6[%c2, %c0_37, %c0_38], %53 {strides = array<i32>} : memref<8x16x128xf32, #tpu.memory_space<vmem>>, vector<1x16x128xf32>,
    %54 = vector.extract_strided_slice %41 {offsets = [54, 0], sizes = [16, 128], strides = [1, 1]} : vector<142x128xf32> to vector<16x128xf32>
    %c3 = arith.constant 3 : index
    %c0_39 = arith.constant 0 : index
    %c0_40 = arith.constant 0 : index
    %55 = vector.load %arg6[%c3, %c0_39, %c0_40] : memref<8x16x128xf32, #tpu.memory_space<vmem>>, vector<1x16x128xf32>
    %56 = vector.shape_cast %55 : vector<1x16x128xf32> to vector<16x128xf32>
    %57 = vector.shape_cast %54 : vector<16x128xf32> to vector<1x16x128xf32>
    tpu.vector_store %arg6[%c3, %c0_39, %c0_40], %57 {strides = array<i32>} : memref<8x16x128xf32, #tpu.memory_space<vmem>>, vector<1x16x128xf32>,
    %58 = vector.extract_strided_slice %41 {offsets = [72, 0], sizes = [16, 128], strides = [1, 1]} : vector<142x128xf32> to vector<16x128xf32>
    %c4 = arith.constant 4 : index
    %c0_41 = arith.constant 0 : index
    %c0_42 = arith.constant 0 : index
    %59 = vector.load %arg6[%c4, %c0_41, %c0_42] : memref<8x16x128xf32, #tpu.memory_space<vmem>>, vector<1x16x128xf32>
    %60 = vector.shape_cast %59 : vector<1x16x128xf32> to vector<16x128xf32>
    %61 = vector.shape_cast %58 : vector<16x128xf32> to vector<1x16x128xf32>
    tpu.vector_store %arg6[%c4, %c0_41, %c0_42], %61 {strides = array<i32>} : memref<8x16x128xf32, #tpu.memory_space<vmem>>, vector<1x16x128xf32>,
    %62 = vector.extract_strided_slice %41 {offsets = [90, 0], sizes = [16, 128], strides = [1, 1]} : vector<142x128xf32> to vector<16x128xf32>
    %c5 = arith.constant 5 : index
    %c0_43 = arith.constant 0 : index
    %c0_44 = arith.constant 0 : index
    %63 = vector.load %arg6[%c5, %c0_43, %c0_44] : memref<8x16x128xf32, #tpu.memory_space<vmem>>, vector<1x16x128xf32>
    %64 = vector.shape_cast %63 : vector<1x16x128xf32> to vector<16x128xf32>
    %65 = vector.shape_cast %62 : vector<16x128xf32> to vector<1x16x128xf32>
    tpu.vector_store %arg6[%c5, %c0_43, %c0_44], %65 {strides = array<i32>} : memref<8x16x128xf32, #tpu.memory_space<vmem>>, vector<1x16x128xf32>,
    %66 = vector.extract_strided_slice %41 {offsets = [108, 0], sizes = [16, 128], strides = [1, 1]} : vector<142x128xf32> to vector<16x128xf32>
    %c6 = arith.constant 6 : index
    %c0_45 = arith.constant 0 : index
    %c0_46 = arith.constant 0 : index
    %67 = vector.load %arg6[%c6, %c0_45, %c0_46] : memref<8x16x128xf32, #tpu.memory_space<vmem>>, vector<1x16x128xf32>
    %68 = vector.shape_cast %67 : vector<1x16x128xf32> to vector<16x128xf32>
    %69 = vector.shape_cast %66 : vector<16x128xf32> to vector<1x16x128xf32>
    tpu.vector_store %arg6[%c6, %c0_45, %c0_46], %69 {strides = array<i32>} : memref<8x16x128xf32, #tpu.memory_space<vmem>>, vector<1x16x128xf32>,
    %70 = vector.extract_strided_slice %41 {offsets = [126, 0], sizes = [16, 128], strides = [1, 1]} : vector<142x128xf32> to vector<16x128xf32>
    %c7 = arith.constant 7 : index
    %c0_47 = arith.constant 0 : index
    %c0_48 = arith.constant 0 : index
    %71 = vector.load %arg6[%c7, %c0_47, %c0_48] : memref<8x16x128xf32, #tpu.memory_space<vmem>>, vector<1x16x128xf32>
    %72 = vector.shape_cast %71 : vector<1x16x128xf32> to vector<16x128xf32>
    %73 = vector.shape_cast %70 : vector<16x128xf32> to vector<1x16x128xf32>
    tpu.vector_store %arg6[%c7, %c0_47, %c0_48], %73 {strides = array<i32>} : memref<8x16x128xf32, #tpu.memory_space<vmem>>, vector<1x16x128xf32>,
    return
  }
  func.func @transform_0(%arg0: i32) -> (i32, i32, i32) {
    %c0_i32 = arith.constant 0 : i32
    %c0_i32_0 = arith.constant 0 : i32
    %c0_i32_1 = arith.constant 0 : i32
    return %arg0, %c0_i32, %c0_i32_0 : i32, i32, i32
  }
  func.func @transform_1(%arg0: i32) -> (i32, i32) {
    %c0_i32 = arith.constant 0 : i32
    %c0_i32_0 = arith.constant 0 : i32
    %c0_i32_1 = arith.constant 0 : i32
    return %c0_i32, %c0_i32_0 : i32, i32
  }
  func.func @transform_2(%arg0: i32) -> (i32, i32) {
    %c0_i32 = arith.constant 0 : i32
    %c0_i32_0 = arith.constant 0 : i32
    %c0_i32_1 = arith.constant 0 : i32
    return %c0_i32, %c0_i32_0 : i32, i32
  }
  func.func @transform_3(%arg0: i32) -> (i32, i32) {
    %c0_i32 = arith.constant 0 : i32
    %c0_i32_0 = arith.constant 0 : i32
    %c0_i32_1 = arith.constant 0 : i32
    return %c0_i32, %c0_i32_0 : i32, i32
  }
  func.func @transform_4(%arg0: i32) -> (i32, i32) {
    %c0_i32 = arith.constant 0 : i32
    %c0_i32_0 = arith.constant 0 : i32
    %c0_i32_1 = arith.constant 0 : i32
    return %c0_i32, %c0_i32_0 : i32, i32
  }
  func.func @transform_5(%arg0: i32) -> (i32, i32, i32) {
    %c0_i32 = arith.constant 0 : i32
    %c0_i32_0 = arith.constant 0 : i32
    %c0_i32_1 = arith.constant 0 : i32
    return %arg0, %c0_i32, %c0_i32_0 : i32, i32, i32
  }
}

</mosaic_0001>

<bundles_post_ra>
// kernel: tile.13
= control target key start
LH: loop header
LB: loop body
LE: loop exit
PB: predicated region body
PF: predicated region fallthrough
CT: control target
= control target key end

     0   :  { %s28_s0 = inlined_call_operand.vmem [shape: f32[8], index: 0, kind: input, shape index: {}]   ;;  %s29_s1 = inlined_call_operand.vmem [shape: f32[16,8], index: 1, kind: output, shape index: {}]  }
   0x1   :  { %v4_v0 = vld [vmem:[%s28_s0] ss:$0 sm:$0xff] }
   0x2   :  { %5 = vst [vmem:[%s29_s1] sm:$0xff] %v4_v0  ;;  %8 = vst [vmem:[%s29_s1 + $0x8] sm:$0xff] %v4_v0 }

// kernel: tile.14
= control target key start
LH: loop header
LB: loop body
LE: loop exit
PB: predicated region body
PF: predicated region fallthrough
CT: control target
= control target key end

     0   :  { %s131_s10 = smov 120   ;;  %s132_s11 = smov 104   ;;  %vm3_vm0 = vcmask 64512   ;;  %vm9_vm1 = vcmask 1048512   ;;  %vm15_vm2 = vcmask 982912   ;;  %vm21_vm3 = vcmask 917312   ;;  %s207_s0 = inlined_call_operand.vmem [shape: f32[16,8], index: 0, kind: input, shape index: {}]   ;;  %s208_s1 = inlined_call_operand.vmem [shape: f32[1,128], index: 1, kind: output, shape index: {}]  }
   0x1   :  { %v101_v0 = vld [vmem:[%s207_s0 + $0xf] sm:$0x1]   ;;  %v103_v1 = vld [vmem:[%s207_s0 + $0xd] sm:$0x1]   ;;  %v102_v2 = vld [vmem:[%s207_s0 + $0xe] sm:$0x1]  }
   0x2   :  { %7 = vrot.lane.b32.xlu0 %v101_v0, %s131_s10  ;;  %19 = vrot.lane.b32.xlu1 %v103_v1, %s132_s11  ;;  %v104_v3 = vld [vmem:[%s207_s0 + $0xc] sm:$0x1]   ;;  %s133_s16 = smov 112   ;;  %s134_s17 = smov 96   ;;  %v105_v4 = vld [vmem:[%s207_s0 + $0xb] sm:$0x1]  }
   0x3   :  { %v106_v5 = vld [vmem:[%s207_s0 + $0xa] sm:$0x1]   ;;  %v2_v6 = vld [vmem:[%s207_s0] sm:$0x1]   ;;  %s135_s24 = smov 88   ;;  %s136_s25 = smov 80  }
   0x4   :  { %4 = vst.msk [vmem:[#allocation0] sm:$0x1] %vm3_vm0, %v2_v6   ;;  %v107_v7 = vld [vmem:[%s207_s0 + $0x9] sm:$0x1]   ;;  %v108_v8 = vld [vmem:[%s207_s0 + $0x8] sm:$0x1]  }
   0x5   :  { %s137_s30 = smov 72   ;;  %s138_s2 = smov 64   ;;  %v109_v9 = vld [vmem:[%s207_s0 + $0x7] sm:$0x1]   ;;  %v110_v10 = vld [vmem:[%s207_s0 + $0x6] sm:$0x1]  }
   0x6   :  { %13 = vrot.lane.b32.xlu0 %v102_v2, %s133_s16  ;;  %25 = vrot.lane.b32.xlu1 %v104_v3, %s134_s17  ;;  %s139_s7 = smov 56   ;;  %s140_s8 = smov 48   ;;  %v111_v11 = vld [vmem:[%s207_s0 + $0x5] sm:$0x1]   ;;  %v112_v12 = vld [vmem:[%s207_s0 + $0x4] sm:$0x1]  }
   0x7   :  { %s141_s13 = smov 40   ;;  %s142_s14 = smov 32   ;;  %v113_v13 = vld [vmem:[%s207_s0 + $0x3] sm:$0x1]   ;;  %v114_v14 = vld [vmem:[%s207_s0 + $0x2] sm:$0x1]  }
   0x8   :  { %s143_s19 = smov 24   ;;  %s144_s20 = smov 16   ;;  %v115_v15 = vld [vmem:[%s207_s0 + $0x1] sm:$0x1]   ;;  %vm27_vm4 = vcmask 851712   ;;  %vm33_vm5 = vcmask 786112  }
   0x9   :  { %s145_s0 = smov 8   ;;  %vm39_vm6 = vcmask 720512   ;;  %vm45_vm7 = vcmask 654912   ;;  %vm51_vm8 = vcmask 589312   ;;  %vm57_vm9 = vcmask 523712  }
   0xa   :  { %31 = vrot.lane.b32.xlu0 %v105_v4, %s135_s24  ;;  %37 = vrot.lane.b32.xlu1 %v106_v5, %s136_s25  ;;  %vm63_vm10 = vcmask 458112   ;;  %vm69_vm11 = vcmask 392512   ;;  %vm75_vm12 = vcmask 326912   ;;  %vm81_vm13 = vcmask 261312  }
   0xb   :  { %vm87_vm14 = vcmask 195712   ;;  %vm93_vm15 = vcmask 130112  }
   0xe   :  { %43 = vrot.lane.b32.xlu0 %v107_v7, %s137_s30  ;;  %49 = vrot.lane.b32.xlu1 %v108_v8, %s138_s2 }
  0x12   :  { %55 = vrot.lane.b32.xlu0 %v109_v9, %s139_s7  ;;  %61 = vrot.lane.b32.xlu1 %v110_v10, %s140_s8 }
  0x16   :  { %67 = vrot.lane.b32.xlu0 %v111_v11, %s141_s13  ;;  %73 = vrot.lane.b32.xlu1 %v112_v12, %s142_s14 }
  0x1a   :  { %79 = vrot.lane.b32.xlu0 %v113_v13, %s143_s19  ;;  %85 = vrot.lane.b32.xlu1 %v114_v14, %s144_s20 }
  0x1e   :  { %91 = vrot.lane.b32.xlu0 %v115_v15, %s145_s0 }
  0x74   :  { %v8_v16 = vpop.permute.xlu0 %7   ;;  %v20_v17 = vpop.permute.xlu1 %19  }
  0x75   :  { %10 = vst.msk [vmem:[#allocation0] sm:$0x1] %vm9_vm1, %v8_v16  }
  0x78   :  { %v14_v18 = vpop.permute.xlu0 %13   ;;  %v26_v19 = vpop.permute.xlu1 %25  }
  0x79   :  { %16 = vst.msk [vmem:[#allocation0] sm:$0x1] %vm15_vm2, %v14_v18  }
  0x7a   :  { %22 = vst.msk [vmem:[#allocation0] sm:$0x1] %vm21_vm3, %v20_v17  }
  0x7b   :  { %28 = vst.msk [vmem:[#allocation0] sm:$0x1] %vm27_vm4, %v26_v19  }
  0x7c   :  { %v32_v20 = vpop.permute.xlu0 %31   ;;  %v38_v21 = vpop.permute.xlu1 %37  }
  0x7d   :  { %34 = vst.msk [vmem:[#allocation0] sm:$0x1] %vm33_vm5, %v32_v20  }
  0x7e   :  { %40 = vst.msk [vmem:[#allocation0] sm:$0x1] %vm39_vm6, %v38_v21  }
  0x80   :  { %v44_v22 = vpop.permute.xlu0 %43   ;;  %v50_v23 = vpop.permute.xlu1 %49  }
  0x81   :  { %46 = vst.msk [vmem:[#allocation0] sm:$0x1] %vm45_vm7, %v44_v22  }
  0x82   :  { %52 = vst.msk [vmem:[#allocation0] sm:$0x1] %vm51_vm8, %v50_v23  }
  0x84   :  { %v56_v24 = vpop.permute.xlu0 %55   ;;  %v62_v25 = vpop.permute.xlu1 %61  }
  0x85   :  { %58 = vst.msk [vmem:[#allocation0] sm:$0x1] %vm57_vm9, %v56_v24  }
  0x86   :  { %64 = vst.msk [vmem:[#allocation0] sm:$0x1] %vm63_vm10, %v62_v25  }
  0x88   :  { %v68_v26 = vpop.permute.xlu0 %67   ;;  %v74_v27 = vpop.permute.xlu1 %73  }
  0x89   :  { %70 = vst.msk [vmem:[#allocation0] sm:$0x1] %vm69_vm11, %v68_v26  }
  0x8a   :  { %76 = vst.msk [vmem:[#allocation0] sm:$0x1] %vm75_vm12, %v74_v27  }
  0x8c   :  { %v80_v28 = vpop.permute.xlu0 %79   ;;  %v86_v29 = vpop.permute.xlu1 %85  }
  0x8d   :  { %82 = vst.msk [vmem:[#allocation0] sm:$0x1] %vm81_vm13, %v80_v28  }
  0x8e   :  { %88 = vst.msk [vmem:[#allocation0] sm:$0x1] %vm87_vm14, %v86_v29  }
  0x90   :  { %v92_v30 = vpop.permute.xlu0 %91  }
  0x91   :  { %94 = vst.msk [vmem:[#allocation0] sm:$0x1] %vm93_vm15, %v92_v30  }
  0x98   :  { %v98_v31 = vld [vmem:[#allocation0] sm:$0x1] }
  0x99   :  { %100 = vst [vmem:[%s208_s1] sm:$0x1] %v98_v31 }

// kernel: basic_block_forward.1
= control target key start
LH: loop header
LB: loop body
LE: loop exit
PB: predicated region body
PF: predicated region fallthrough
CT: control target
= control target key end

     0   :  { %s2281_s18 = smov 0   ;;  %s2758_s0 = inlined_call_operand.vmem [shape: bf16[2,144,128], index: 0, kind: input, shape index: {}]   ;;  %s2759_s1 = inlined_call_operand.vmem [shape: bf16[384,128], index: 1, kind: input, shape index: {}]   ;;  %s2760_s2 = inlined_call_operand.vmem [shape: f32[1,128], index: 2, kind: input, shape index: {}]   ;;  %s2761_s3 = inlined_call_operand.vmem [shape: bf16[384,128], index: 3, kind: input, shape index: {}]   ;;  %s2762_s4 = inlined_call_operand.vmem [shape: f32[1,128], index: 4, kind: input, shape index: {}]   ;;  %s2763_s5 = inlined_call_operand.vmem [shape: f32[16,16,128], index: 5, kind: output, shape index: {}]  }
   0x1 LB: > { %s2287_s19 = sadd.s32 4294967295, %s2247_s18   ;;  %p1764_p0 = scmp.ge.s32.totalorder %s2247_s18, 1  ;;  %s2247_s18 = sphi %s2281_s18, %s15_s18  }
   0x2   : > { %p187_p1 = scmp.lt.s32.totalorder %s2247_s18, 3 }
   0x4   : > { %p188_p2 = pnand %p1764_p0, %p187_p1 }
   0x5   : > { %v2184_v0 = vld [vmem:[%s2759_s1 + $0x40] sm:$0xff] (!%p188_p2)   ;;  %v2249_v2 = vmov (!%p188_p2), 0.0   ;;  %v2187_v4 = vld [vmem:[%s2759_s1 + $0x48] sm:$0xff] (!%p188_p2)   ;;  %vm2250_vm0 = vmmov (!%p188_p2), 0   ;;  %v2190_v7 = vld [vmem:[%s2759_s1 + $0x50] sm:$0xff] (!%p188_p2)   ;;  %p216_p3 = scmp.lt.s32.totalorder (!%p188_p2), %s2287_s19, 1 }
   0x6   : > { %191 = sbr.rel (%p188_p2) target bundleno = 592 (0x250), region = 40  ;;  %v2185_v1 = vld [vmem:[%s2759_s1] sm:$0xff] (!%p188_p2)   ;;  %2069 = vmatprep.subr.bf16.mxu1 (!%p188_p2), %v2249_v2  ;;  %1895 = vmatprep.subr.bf16.mxu0 (!%p188_p2), %v2184_v0  ;;  %v2188_v5 = vld [vmem:[%s2759_s1 + $0x8] sm:$0xff] (!%p188_p2)   ;;  %v2191_v8 = vld [vmem:[%s2759_s1 + $0x10] sm:$0xff] (!%p188_p2)   ;;  %vm301_vm1 = vsmask.f32 (!%p188_p2), 7424 }
   0x7   : > { %v2186_v3 = vld [vmem:[%s2759_s1 + $0x80] sm:$0xff] (!%p188_p2)   ;;  %1896 = vmatpush3.bf16.msra.mxu0 (!%p188_p2), %v2185_v1  ;;  %2085 = vmatprep.mubr.msk.bf16.mxu1 (!%p188_p2), %vm2250_vm0, %v2249_v2  ;;  %v2189_v6 = vld [vmem:[%s2759_s1 + $0x88] sm:$0xff] (!%p188_p2)   ;;  %v2192_v9 = vld [vmem:[%s2759_s1 + $0x90] sm:$0xff] (!%p188_p2)   ;;  %vm382_vm2 = vcmask (!%p188_p2), 1046528   ;;  %vm926_vm3 = vcmask (!%p188_p2), 1047552   ;;  %vm943_vm7 = vcmask (!%p188_p2), 1040384  }
   0x8   : > { %2070 = vmatpush3.bf16.msra.mxu1 (!%p188_p2), %v2186_v3  ;;  %1897 = vmatprep.subr.bf16.mxu0 (!%p188_p2), %v2187_v4  ;;  %v2193_v10 = vld [vmem:[%s2759_s1 + $0x58] sm:$0xff] (!%p188_p2)   ;;  %v2196_v13 = vld [vmem:[%s2759_s1 + $0x60] sm:$0xff] (!%p188_p2)   ;;  %v2199_v16 = vld [vmem:[%s2759_s1 + $0x68] sm:$0xff] (!%p188_p2)   ;;  %vm927_vm4 = vsmask.f32 (!%p188_p2), 7938  ;;  %vm954_vm9 = vcmask (!%p188_p2), 1041408  }
   0x9   : > { %2071 = vmatprep.subr.bf16.mxu1 (!%p188_p2), %v2249_v2  ;;  %v2194_v11 = vld [vmem:[%s2759_s1 + $0x18] sm:$0xff] (!%p188_p2)   ;;  %v2197_v14 = vld [vmem:[%s2759_s1 + $0x20] sm:$0xff] (!%p188_p2)   ;;  %v2200_v17 = vld [vmem:[%s2759_s1 + $0x28] sm:$0xff] (!%p188_p2)   ;;  %vm845_vm6 = vsmask.f32 (!%p188_p2), 256  ;;  %vm960_vm12 = vcmask (!%p188_p2), 1042433  }
   0xa   : > { %v2195_v12 = vld [vmem:[%s2759_s1 + $0x98] sm:$0xff] (!%p188_p2)   ;;  %v2198_v15 = vld [vmem:[%s2759_s1 + $0xa0] sm:$0xff] (!%p188_p2)   ;;  %v2201_v18 = vld [vmem:[%s2759_s1 + $0xa8] sm:$0xff] (!%p188_p2)   ;;  %vm955_vm10 = vsmask.f32 (!%p188_p2), 1282  ;;  %vm966_vm15 = vcmask (!%p188_p2), 1043458  }
   0xb   : > { %1898 = vmatpush3.bf16.msra.mxu0 (!%p188_p2), %v2188_v5  ;;  %v2202_v19 = vld [vmem:[%s2759_s1 + $0x70] sm:$0xff] (!%p188_p2)   ;;  %v2205_v22 = vld [vmem:[%s2759_s1 + $0x78] sm:$0xff] (!%p188_p2)   ;;  %v2217_v48 = vld [vmem:[%s2761_s3 + $0x40] sm:$0xff] (!%p188_p2)   ;;  %vm961_vm13 = vsmask.f32 (!%p188_p2), 2310  ;;  %s1766_s8 = sshll.u32 (!%p188_p2), %s2287_s19, 3 }
   0xc   : > { %2072 = vmatpush3.bf16.msra.mxu1 (!%p188_p2), %v2189_v6  ;;  %1899 = vmatprep.subr.bf16.mxu0 (!%p188_p2), %v2190_v7  ;;  %v2203_v20 = vld [vmem:[%s2759_s1 + $0x30] sm:$0xff] (!%p188_p2)   ;;  %v2206_v25 = vld [vmem:[%s2759_s1 + $0x38] sm:$0xff] (!%p188_p2)   ;;  %v2218_v53 = vld [vmem:[%s2761_s3] sm:$0xff] (!%p188_p2)   ;;  %p222_p4 = scmp.lt.s32.totalorder (!%p188_p2), %s1766_s8, 15 }
   0xd   : > { %2073 = vmatprep.subr.bf16.mxu1 %v2249_v2  ;;  %s217_s23 = scalar_select %p216_p3, %s2287_s19, 1  ;;  %v2204_v21 = vld [vmem:[%s2759_s1 + $0xb0] sm:$0xff]   ;;  %v2209_v29 = vld [vmem:[%s2759_s1 + $0xb8] sm:$0xff]   ;;  %v2219_v55 = vld [vmem:[%s2761_s3 + $0x80] sm:$0xff]  }
   0xe   : > { %v2220_v56 = vld [vmem:[%s2761_s3 + $0x48] sm:$0xff]   ;;  %v2223_v3 = vld [vmem:[%s2761_s3 + $0x50] sm:$0xff]   ;;  %vm2537_vm5 = vmand %vm926_vm3, %vm927_vm4  ;;  %vm967_vm4 = vsmask.f32 3338  ;;  %s2781_s8 = smov (!%p222_p4, %s1766_s8), 15 }
   0xf   : > { %1900 = vmatpush3.bf16.msra.mxu0 %v2191_v8  ;;  %s2173_s30 = smul.u32 72, %s217_s23  ;;  %v2221_v62 = vld [vmem:[%s2761_s3 + $0x8] sm:$0xff]   ;;  %v2224_v6 = vld [vmem:[%s2761_s3 + $0x10] sm:$0xff]   ;;  %vm2546_vm8 = vmand %vm943_vm7, %vm845_vm6  ;;  %vm972_vm7 = vcmask 1044483   ;;  %s1850_s19 = sshll.u32 %s2781_s8, 4 }
  0x10   : > { %2074 = vmatpush3.bf16.msra.mxu1 %v2192_v9  ;;  %1901 = vmatprep.subr.bf16.mxu0 %v2193_v10  ;;  %v2222_v0 = vld [vmem:[%s2761_s3 + $0x88] sm:$0xff]   ;;  %vm2555_vm11 = vmand %vm954_vm9, %vm955_vm10  ;;  %vm978_vm10 = vcmask 1045508   ;;  %s2694_s13 = scalar_lea.vmem %s2763_s5, %s1850_s19 }
  0x11   : > { %2075 = vmatprep.subr.bf16.mxu1 %v2249_v2  ;;  %s2364_s16 = scalar_lea.vmem %s2758_s0, %s2173_s30  ;;  %vm2567_vm14 = vmand %vm960_vm12, %vm961_vm13  ;;  %vm984_vm13 = vcmask 1046533  }
  0x12   : > { %v2207_v23 = vld [vmem:[%s2364_s16] sm:$0xff]   ;;  %v2208_v24 = vld [vmem:[%s2364_s16 + $0x8] sm:$0xff]   ;;  %v2382_v32 = vld [vmem:[%s2364_s16 + $0x10] sm:$0xff]  }
  0x13   : > { %1902 = vmatpush3.bf16.msra.mxu0 %v2194_v11  ;;  %v303_v26 = vshrl.u32 %v2207_v23, 16  ;;  %v305_v27 = vshll.u32 %v2207_v23, 16  ;;  %v310_v28 = vshll.u32 %v2208_v24, 16  ;;  %v383_v30 = vrot.slane %v2207_v23, 1  ;;  %v2385_v34 = vld [vmem:[%s2364_s16 + $0x18] sm:$0xff]   ;;  %v2396_v46 = vld [vmem:[%s2364_s16 + $0x20] sm:$0xff]  }
  0x14   : > { %2076 = vmatpush3.bf16.msra.mxu1 %v2195_v12  ;;  %1903 = vmatprep.subr.bf16.mxu0 %v2196_v13  ;;  %v384_v31 = vrot.slane %v2208_v24, 1  ;;  %v314_v33 = vshrl.u32 %v2208_v24, 16  ;;  %v318_v37 = vshll.u32 %v2382_v32, 16  ;;  %v322_v43 = vshrl.u32 %v2382_v32, 16  ;;  %v2405_v51 = vld [vmem:[%s2364_s16 + $0x28] sm:$0xff]   ;;  %v2214_v9 = vld [vmem:[%s2364_s16 + $0x30] sm:$0xff]  }
  0x15   : > { %2077 = vmatprep.subr.bf16.mxu1 %v2249_v2  ;;  %v307_v35 = vrot.slane %v305_v27, 1  ;;  %v312_v36 = vrot.slane %v310_v28, 1  ;;  %v326_v44 = vshll.u32 %v2385_v34, 16  ;;  %v386_v47 = vrot.slane %v2382_v32, 1 }
  0x16   : > { %v320_v40 = vrot.slane %v318_v37, 1  ;;  %v385_v42 = vsel %vm382_vm2, %v383_v30, %v384_v31  ;;  %v334_v52 = vshll.u32 %v2396_v46, 16  ;;  %v388_v54 = vrot.slane %v2385_v34, 1 }
  0x17   : > { %1904 = vmatpush3.bf16.msra.mxu0 %v2197_v14  ;;  %v308_v38 = vor.u32 %v307_v35, %v303_v26  ;;  %v316_v39 = vor.u32 %v314_v33, %v312_v36  ;;  %v328_v50 = vrot.slane %v326_v44, 1  ;;  %v387_v57 = vsel %vm382_vm2, %v384_v31, %v386_v47  ;;  %v2216_v26 = vld [vmem:[%s2364_s16 + $0x40] sm:$0xff]  }
  0x18   : > { %2078 = vmatpush3.bf16.msra.mxu1 %v2198_v15  ;;  %1905 = vmatprep.subr.bf16.mxu0 %v2199_v16  ;;  %v324_v49 = vor.u32 %v322_v43, %v320_v40  ;;  %v330_v59 = vshrl.u32 %v2385_v34, 16  ;;  %v342_v60 = vshll.u32 %v2405_v51, 16  ;;  %v390_v61 = vrot.slane %v2396_v46, 1  ;;  %v2227_v43 = vld [vmem:[%s2761_s3 + $0x18] sm:$0xff]   ;;  %v2231_v44 = vld [vmem:[%s2761_s3 + $0xa0] sm:$0xff]  }
  0x19   : > { %2079 = vmatprep.subr.bf16.mxu1 %v2249_v2  ;;  %v313_v41 = vsel %vm301_vm1, %v308_v38, %v312_v36  ;;  %v321_v45 = vsel %vm301_vm1, %v316_v39, %v320_v40  ;;  %v336_v63 = vrot.slane %v334_v52, 1  ;;  %v338_v1 = vshrl.u32 %v2396_v46, 16  ;;  %v2225_v40 = vld [vmem:[%s2761_s3 + $0x90] sm:$0xff]  }
  0x1a   : > { %640 = vmatprep.mubr.bf16.mxu0 %v313_v41  ;;  %v329_v58 = vsel %vm301_vm1, %v324_v49, %v328_v50  ;;  %v332_v4 = vor.u32 %v330_v59, %v328_v50  ;;  %v344_v5 = vrot.slane %v342_v60, 1  ;;  %v389_v7 = vsel %vm382_vm2, %v386_v47, %v388_v54  ;;  %v2228_v41 = vld [vmem:[%s2761_s3 + $0x98] sm:$0xff]   ;;  %v2234_v47 = vld [vmem:[%s2761_s3 + $0xa8] sm:$0xff]   ;;  %v2237_v50 = vld [vmem:[%s2761_s3 + $0xb0] sm:$0xff]  }
  0x1b   : > { %1906 = vmatpush3.bf16.msra.mxu0 %v2200_v17  ;;  %v340_v10 = vor.u32 %v338_v1, %v336_v63  ;;  %v391_v11 = vsel %vm382_vm2, %v388_v54, %v390_v61  ;;  %v346_v13 = vshrl.u32 %v2405_v51, 16  ;;  %v350_v14 = vshll.u32 %v2214_v9, 16  ;;  %v2233_v49 = vld [vmem:[%s2761_s3 + $0x28] sm:$0xff]   ;;  %v2236_v52 = vld [vmem:[%s2761_s3 + $0x30] sm:$0xff]   ;;  %v2238_v54 = vld [vmem:[%s2761_s3 + $0x78] sm:$0xff]  }
  0x1c   : > { %2080 = vmatpush3.bf16.msra.mxu1 %v2201_v18  ;;  %1907 = vmatprep.subr.bf16.mxu0 %v2202_v19  ;;  %v337_v8 = vsel %vm301_vm1, %v332_v4, %v336_v63  ;;  %v392_v15 = vrot.slane %v2405_v51, 1  ;;  %v2215_v18 = vld [vmem:[%s2364_s16 + $0x38] sm:$0xff]   ;;  %v366_v30 = vshll.u32 %v2216_v26, 16  ;;  %v370_v36 = vshrl.u32 %v2216_v26, 16 }
  0x1d   : > { %2081 = vmatprep.subr.bf16.mxu1 %v2249_v2  ;;  %v345_v12 = vsel %vm301_vm1, %v340_v10, %v344_v5  ;;  %v348_v16 = vor.u32 %v346_v13, %v344_v5  ;;  %v352_v17 = vrot.slane %v350_v14, 1  ;;  %v396_v31 = vrot.slane %v2215_v18, 1 }
  0x1e   : > { %v393_v19 = vsel %vm382_vm2, %v390_v61, %v392_v15  ;;  %v368_v33 = vrot.slane %v366_v30, 1  ;;  %v398_v37 = vrot.slane %v2216_v26, 1  ;;  %v929_v30 = vld [vmem:[#allocation2] sm:$0xff] }
  0x1f   : > { %1908 = vmatpush3.bf16.msra.mxu0 %v2203_v20  ;;  %v353_v20 = vsel %vm301_vm1, %v348_v16, %v352_v17 }
  0x20   : > { %2082 = vmatpush3.bf16.msra.mxu1 %v2204_v21  ;;  %1909 = vmatprep.subr.bf16.mxu0 %v2205_v22  ;;  %v354_v21 = vshrl.u32 %v2214_v9, 16  ;;  %v358_v22 = vshll.u32 %v2215_v18, 16  ;;  %v372_v38 = vor.u32 %v370_v36, %v368_v33  ;;  %v399_v39 = vsel %vm382_vm2, %v396_v31, %v398_v37 }
  0x21   : > { %2083 = vmatprep.subr.bf16.mxu1 %v2249_v2 }
  0x23   : > { %1910 = vmatpush3.bf16.msra.mxu0 %v2206_v25  ;;  %v360_v25 = vrot.slane %v358_v22, 1 }
  0x24   : > { %2084 = vmatpush3.bf16.msra.mxu1 %v2209_v29  ;;  %1982 = vmatprep.subr.bf16.mxu0 %v2217_v48  ;;  %v362_v29 = vshrl.u32 %v2215_v18, 16  ;;  %v2232_v48 = vld [vmem:[%s2761_s3 + $0x68] sm:$0xff]  }
  0x25   : > { %2121 = vmatprep.subr.bf16.mxu1 %v2249_v2 }
  0x26   : > { %641 = vmatmul.mubr.bf16.vlgmr.msra.gmra.mrb[0].mxu0 %v2207_v23  ;;  %v394_v23 = vrot.slane %v2214_v9, 1 }
  0x27   : > { %2086 = vmatmul.mubr.bf16.vlgmr.msra.gmra.mrb[0].mxu1 %v385_v42  ;;  %648 = vmatprep.mubr.bf16.mxu0 %v321_v45  ;;  %v2226_v42 = vld [vmem:[%s2761_s3 + $0x58] sm:$0xff]   ;;  %v2229_v45 = vld [vmem:[%s2761_s3 + $0x60] sm:$0xff]  }
  0x28   : > { %2089 = vmatprep.mubr.msk.bf16.mxu1 %vm2250_vm0, %v2249_v2  ;;  %1983 = vmatpush3.bf16.msra.mxu0 %v2218_v53  ;;  %v395_v27 = vsel %vm382_vm2, %v392_v15, %v394_v23  ;;  %v2240_v53 = vld [vmem:[%s2761_s3 + $0xb8] sm:$0xff]  }
  0x29   : > { %2122 = vmatpush3.bf16.msra.mxu1 %v2219_v55  ;;  %1984 = vmatprep.subr.bf16.mxu0 %v2220_v56  ;;  %v2239_v55 = vld [vmem:[%s2761_s3 + $0x38] sm:$0xff]  }
  0x2a   : > { %2123 = vmatprep.subr.bf16.mxu1 %v2249_v2 }
  0x2c   : > { %1985 = vmatpush3.bf16.msra.mxu0 %v2221_v62 }
  0x2d   : > { %2124 = vmatpush3.bf16.msra.mxu1 %v2222_v0  ;;  %1986 = vmatprep.subr.bf16.mxu0 %v2223_v3 }
  0x2e   : > { %649 = vmatmul.mubr.bf16.gmra.mrb[4].mxu0 %v2208_v24  ;;  %2125 = vmatprep.subr.bf16.mxu1 %v2249_v2  ;;  %v356_v24 = vor.u32 %v354_v21, %v352_v17 }
  0x2f   : > { %2090 = vmatmul.mubr.bf16.gmra.mrb[4].mxu1 %v387_v57  ;;  %656 = vmatprep.mubr.bf16.mxu0 %v329_v58  ;;  %v2530_v58 = vld [vmem:[%s2760_s2] ss:$0 sm:$0xff] }
  0x30   : > { %2093 = vmatprep.mubr.msk.bf16.mxu1 %vm2250_vm0, %v2249_v2  ;;  %1987 = vmatpush3.bf16.msra.mxu0 %v2224_v6  ;;  %v361_v28 = vsel %vm301_vm1, %v356_v24, %v360_v25 }
  0x31   : > { %2126 = vmatpush3.bf16.msra.mxu1 %v2225_v40  ;;  %1988 = vmatprep.subr.bf16.mxu0 %v2226_v42 }
  0x32   : > { %2127 = vmatprep.subr.bf16.mxu1 %v2249_v2 }
  0x34   : > { %1989 = vmatpush3.bf16.msra.mxu0 %v2227_v43 }
  0x35   : > { %2128 = vmatpush3.bf16.msra.mxu1 %v2228_v41  ;;  %1990 = vmatprep.subr.bf16.mxu0 %v2229_v45 }
  0x36   : > { %657 = vmatmul.mubr.bf16.gmra.mrb[8].mxu0 %v2382_v32  ;;  %v364_v32 = vor.u32 %v362_v29, %v360_v25  ;;  %2129 = vmatprep.subr.bf16.mxu1 %v2249_v2 }
  0x37   : > { %2094 = vmatmul.mubr.bf16.gmra.mrb[8].mxu1 %v389_v7  ;;  %664 = vmatprep.mubr.bf16.mxu0 %v337_v8 }
  0x38   : > { %2097 = vmatprep.mubr.msk.bf16.mxu1 %vm2250_vm0, %v2249_v2  ;;  %v369_v35 = vsel %vm301_vm1, %v364_v32, %v368_v33 }
  0x39   : > { %2130 = vmatpush3.bf16.msra.mxu1 %v2231_v44 }
  0x3a   : > { %2131 = vmatprep.subr.bf16.mxu1 %v2249_v2 }
  0x3d   : > { %2132 = vmatpush3.bf16.msra.mxu1 %v2234_v47 }
  0x3e   : > { %665 = vmatmul.mubr.bf16.gmra.mrb[12].mxu0 %v2385_v34  ;;  %v397_v34 = vsel %vm382_vm2, %v394_v23, %v396_v31  ;;  %2133 = vmatprep.subr.bf16.mxu1 %v2249_v2 }
  0x3f   : > { %2098 = vmatmul.mubr.bf16.gmra.mrb[12].mxu1 %v391_v11  ;;  %672 = vmatprep.mubr.bf16.mxu0 %v345_v12 }
  0x40   : > { %2101 = vmatprep.mubr.msk.bf16.mxu1 %vm2250_vm0, %v2249_v2 }
  0x41   : > { %2134 = vmatpush3.bf16.msra.mxu1 %v2237_v50 }
  0x42   : > { %2135 = vmatprep.subr.bf16.mxu1 %v2249_v2 }
  0x45   : > { %2136 = vmatpush3.bf16.msra.mxu1 %v2240_v53 }
  0x46   : > { %673 = vmatmul.mubr.bf16.gmra.mrb[16].mxu0 %v2396_v46  ;;  %v2230_v46 = vld [vmem:[%s2761_s3 + $0x20] sm:$0xff]  }
  0x47   : > { %2102 = vmatmul.mubr.bf16.gmra.mrb[16].mxu1 %v393_v19  ;;  %680 = vmatprep.mubr.bf16.mxu0 %v353_v20 }
  0x48   : > { %2105 = vmatprep.mubr.msk.bf16.mxu1 %vm2250_vm0, %v2249_v2  ;;  %1991 = vmatpush3.bf16.msra.mxu0 %v2230_v46 }
  0x49   : > { %1992 = vmatprep.subr.bf16.mxu0 %v2232_v48 }
  0x4c   : > { %1993 = vmatpush3.bf16.msra.mxu0 %v2233_v49 }
  0x4e   : > { %681 = vmatmul.mubr.bf16.gmra.mrb[20].mxu0 %v2405_v51  ;;  %v2235_v51 = vld [vmem:[%s2761_s3 + $0x70] sm:$0xff]  }
  0x4f   : > { %2106 = vmatmul.mubr.bf16.gmra.mrb[20].mxu1 %v395_v27  ;;  %688 = vmatprep.mubr.bf16.mxu0 %v361_v28 }
  0x50   : > { %2109 = vmatprep.mubr.msk.bf16.mxu1 %vm2250_vm0, %v2249_v2  ;;  %1994 = vmatprep.subr.bf16.mxu0 %v2235_v51 }
  0x51   : > { %1995 = vmatpush3.bf16.msra.mxu0 %v2236_v52 }
  0x52   : > { %1996 = vmatprep.subr.bf16.mxu0 %v2238_v54 }
  0x55   : > { %1997 = vmatpush3.bf16.msra.mxu0 %v2239_v55 }
  0x56   : > { %689 = vmatmul.mubr.bf16.gmra.mrb[24].mxu0 %v2214_v9 }
  0x57   : > { %2110 = vmatmul.mubr.bf16.gmra.mrb[24].mxu1 %v397_v34  ;;  %696 = vmatprep.mubr.bf16.mxu0 %v369_v35 }
  0x58   : > { %2113 = vmatprep.mubr.msk.bf16.mxu1 %vm2250_vm0, %v2249_v2 }
  0x5e   : > { %697 = vmatmul.mubr.bf16.gmra.mrb[28].mxu0 %v2215_v18 }
  0x5f   : > { %2114 = vmatmul.mubr.bf16.gmra.mrb[28].mxu1 %v399_v39  ;;  %704 = vmatprep.mubr.bf16.mxu0 %v372_v38 }
  0x60   : > { %2117 = vmatprep.mubr.msk.bf16.mxu1 %vm2250_vm0, %v2249_v2 }
  0x66   : > { %705 = vmatmul.mubr.bf16.gmra.mrb[32].mxu0 %v2216_v26 }
  0x67   : > { %2118 = vmatmul.mubr.bf16.gmra.mrb[32].mxu1 %v398_v37 }
  0x68   : > { %2137 = vmatprep.mubr.msk.bf16.mxu1 %vm2250_vm0, %v2249_v2 }
  0xf9   : > { %v1911_v56 = vpop.f32.mrb[0].mxu0 }
  0xfa   : > { %v1912_v57 = vpop.f32.mrb[1].mxu0  ;;  %v747_v59 = vpop.f32.mrb[0].mxu1 }
  0xfb   : > { %v1913_v60 = vadd.f32 %v1912_v57, %v1911_v56  ;;  %v1914_v61 = vpop.f32.mrb[2].mxu0  ;;  %v2087_v62 = vpop.f32.mrb[1].mxu1 }
  0xfc   : > { %v1915_v63 = vpop.f32.mrb[3].mxu0  ;;  %v750_v0 = vpop.f32.mrb[2].mxu1 }
  0xfd   : > { %v643_v1 = vadd.f32 %v1913_v60, %v2530_v58  ;;  %v1916_v3 = vadd.f32 %v1915_v63, %v1914_v61  ;;  %v2088_v4 = vpop.f32.mrb[3].mxu1 }
  0xff   : > { %v748_v5 = vadd.f32 %v747_v59, %v643_v1  ;;  %v646_v6 = vadd.f32 %v1916_v3, %v2530_v58 }
 0x101   : > { %v751_v7 = vadd.f32 %v750_v0, %v646_v6  ;;  %v1917_v8 = vpop.f32.mrb[4].mxu0  ;;  %v818_v11 = vmax.f32 %v748_v5, 0.0 }
 0x102   : > { %v1918_v9 = vpop.f32.mrb[5].mxu0  ;;  %v755_v10 = vpop.f32.mrb[4].mxu1 }
 0x103   : > { %v819_v12 = vmax.f32 %v751_v7, 0.0  ;;  %v1919_v13 = vadd.f32 %v1918_v9, %v1917_v8  ;;  %v1920_v14 = vpop.f32.mrb[6].mxu0  ;;  %v2091_v15 = vpop.f32.mrb[5].mxu1 }
 0x104   : > { %v1921_v16 = vpop.f32.mrb[7].mxu0  ;;  %v758_v17 = vpop.f32.mrb[6].mxu1 }
 0x105   : > { %v836_v18 = vpack.c.bf16 %v819_v12, %v818_v11  ;;  %v651_v19 = vadd.f32 %v1919_v13, %v2530_v58  ;;  %v1922_v20 = vadd.f32 %v1921_v16, %v1920_v14  ;;  %v2092_v21 = vpop.f32.mrb[7].mxu1 }
 0x107   : > { %v847_v22 = vshrl.u32 %v836_v18, 16  ;;  %v756_v23 = vadd.f32 %v755_v10, %v651_v19  ;;  %v654_v24 = vadd.f32 %v1922_v20, %v2530_v58  ;;  %v850_v26 = vshll.u32 %v836_v18, 16 }
 0x109   : > { %v849_v25 = vrot.slane %v847_v22, 7  ;;  %v759_v27 = vadd.f32 %v758_v17, %v654_v24  ;;  %v1923_v28 = vpop.f32.mrb[8].mxu0  ;;  %v820_v34 = vmax.f32 %v756_v23, 0.0 }
 0x10a   : > { %v1924_v31 = vpop.f32.mrb[9].mxu0  ;;  %v763_v32 = vpop.f32.mrb[8].mxu1 }
 0x10b   : > { %v852_v33 = vor.u32 %v850_v26, %v849_v25  ;;  %v821_v35 = vmax.f32 %v759_v27, 0.0  ;;  %v1925_v36 = vadd.f32 %v1924_v31, %v1923_v28  ;;  %v1926_v37 = vpop.f32.mrb[10].mxu0  ;;  %v2095_v38 = vpop.f32.mrb[9].mxu1 }
 0x10c   : > { %v1927_v39 = vpop.f32.mrb[11].mxu0  ;;  %v766_v40 = vpop.f32.mrb[10].mxu1 }
 0x10d   : > { %v930_v41 = vsel %vm2537_vm5, %v852_v33, %v929_v30  ;;  %v837_v42 = vpack.c.bf16 %v821_v35, %v820_v34  ;;  %v659_v43 = vadd.f32 %v1925_v36, %v2530_v58  ;;  %v1928_v44 = vadd.f32 %v1927_v39, %v1926_v37  ;;  %v2096_v45 = vpop.f32.mrb[11].mxu1  ;;  %vm2587_vm5 = vmand %vm966_vm15, %vm967_vm4 }
 0x10e   : > { %931 = vst [vmem:[#allocation2] sm:$0xff] %v930_v41  ;;  %vm990_vm4 = vcmask 1047558  }
 0x10f   : > { %v854_v46 = vshrl.u32 %v837_v42, 16  ;;  %v764_v47 = vadd.f32 %v763_v32, %v659_v43  ;;  %v662_v48 = vadd.f32 %v1928_v44, %v2530_v58  ;;  %v857_v50 = vshll.u32 %v837_v42, 16 }
 0x111   : > { %v856_v49 = vrot.slane %v854_v46, 7  ;;  %v767_v51 = vadd.f32 %v766_v40, %v662_v48  ;;  %v1929_v52 = vpop.f32.mrb[12].mxu0  ;;  %v822_v57 = vmax.f32 %v764_v47, 0.0 }
 0x112   : > { %v1930_v53 = vpop.f32.mrb[13].mxu0  ;;  %v771_v54 = vpop.f32.mrb[12].mxu1 }
 0x113   : > { %v859_v56 = vor.u32 %v857_v50, %v856_v49  ;;  %v823_v59 = vmax.f32 %v767_v51, 0.0  ;;  %v1931_v60 = vadd.f32 %v1930_v53, %v1929_v52  ;;  %v1932_v61 = vpop.f32.mrb[14].mxu0  ;;  %v2099_v62 = vpop.f32.mrb[13].mxu1 }
 0x114   : > { %v1933_v63 = vpop.f32.mrb[15].mxu0  ;;  %v774_v0 = vpop.f32.mrb[14].mxu1 }
 0x115   : > { %v945_v1 = vld [vmem:[#allocation2] sm:$0x1]  ;;  %v860_v3 = vsel %vm845_vm6, %v849_v25, %v859_v56  ;;  %v838_v4 = vpack.c.bf16 %v823_v59, %v822_v57  ;;  %v667_v5 = vadd.f32 %v1931_v60, %v2530_v58  ;;  %v1934_v6 = vadd.f32 %v1933_v63, %v1932_v61  ;;  %v2100_v7 = vpop.f32.mrb[15].mxu1 }
 0x116   : > { %v946_v8 = vsel %vm2546_vm8, 0, %v945_v1  ;;  %932 = vst [vmem:[#allocation2 + $0x8] sm:$0xff] %v860_v3  ;;  %vm973_vm8 = vsmask.f32 4366 }
 0x117   : > { %947 = vst [vmem:[#allocation2] sm:$0x1] %v946_v8  ;;  %v862_v9 = vshrl.u32 %v838_v4, 16  ;;  %v772_v10 = vadd.f32 %v771_v54, %v667_v5  ;;  %v670_v11 = vadd.f32 %v1934_v6, %v2530_v58  ;;  %v865_v13 = vshll.u32 %v838_v4, 16  ;;  %vm2610_vm9 = vmand %vm972_vm7, %vm973_vm8 }
 0x118   : > { %vm939_vm7 = vmand %vm926_vm3, %vm301_vm1  ;;  %vm948_vm3 = vcmask 1047559  }
 0x119   : > { %v864_v12 = vrot.slane %v862_v9, 7  ;;  %v775_v14 = vadd.f32 %v774_v0, %v670_v11  ;;  %v1935_v15 = vpop.f32.mrb[16].mxu0  ;;  %v824_v20 = vmax.f32 %v772_v10, 0.0 }
 0x11a   : > { %v1936_v16 = vpop.f32.mrb[17].mxu0  ;;  %v779_v17 = vpop.f32.mrb[16].mxu1 }
 0x11b   : > { %v867_v19 = vor.u32 %v865_v13, %v864_v12  ;;  %v825_v21 = vmax.f32 %v775_v14, 0.0  ;;  %v1937_v22 = vadd.f32 %v1936_v16, %v1935_v15  ;;  %v1938_v23 = vpop.f32.mrb[18].mxu0  ;;  %v2103_v24 = vpop.f32.mrb[17].mxu1 }
 0x11c   : > { %v1939_v25 = vpop.f32.mrb[19].mxu0  ;;  %v782_v26 = vpop.f32.mrb[18].mxu1 }
 0x11d   : > { %v957_v27 = vld [vmem:[#allocation2 + $0x8] sm:$0x3]  ;;  %v868_v28 = vsel %vm845_vm6, %v856_v49, %v867_v19  ;;  %v839_v29 = vpack.c.bf16 %v825_v21, %v824_v20  ;;  %v675_v30 = vadd.f32 %v1937_v22, %v2530_v58  ;;  %v1940_v31 = vadd.f32 %v1939_v25, %v1938_v23  ;;  %v2104_v32 = vpop.f32.mrb[19].mxu1 }
 0x11e   : > { %v958_v33 = vsel %vm2555_vm11, 0, %v957_v27  ;;  %933 = vst [vmem:[#allocation2 + $0x10] sm:$0xff] %v868_v28  ;;  %v2564_v37 = vld [vmem:[#allocation2] sm:$0xff]  ;;  %vm979_vm11 = vsmask.f32 5394 }
 0x11f   : > { %959 = vst [vmem:[#allocation2 + $0x8] sm:$0x3] %v958_v33  ;;  %v870_v34 = vshrl.u32 %v839_v29, 16  ;;  %v780_v35 = vadd.f32 %v779_v17, %v675_v30  ;;  %v678_v36 = vadd.f32 %v1940_v31, %v2530_v58  ;;  %v873_v39 = vshll.u32 %v839_v29, 16  ;;  %vm2632_vm12 = vmand %vm978_vm10, %vm979_vm11 }
 0x120   : > { %v1008_v44 = vshll.u32 %v2564_v37, 16  ;;  %v1094_v4 = vrot.slane %v2564_v37, 1  ;;  %v1006_v6 = vshrl.u32 %v2564_v37, 16 }
 0x121   : > { %v872_v38 = vrot.slane %v870_v34, 7  ;;  %v783_v40 = vadd.f32 %v782_v26, %v678_v36  ;;  %v1941_v41 = vpop.f32.mrb[20].mxu0  ;;  %v826_v47 = vmax.f32 %v780_v35, 0.0 }
 0x122   : > { %v1942_v42 = vpop.f32.mrb[21].mxu0  ;;  %v787_v43 = vpop.f32.mrb[20].mxu1  ;;  %v1010_v63 = vrot.slane %v1008_v44, 1 }
 0x123   : > { %v875_v46 = vor.u32 %v873_v39, %v872_v38  ;;  %v827_v48 = vmax.f32 %v783_v40, 0.0  ;;  %v1943_v49 = vadd.f32 %v1942_v42, %v1941_v41  ;;  %v1944_v50 = vpop.f32.mrb[22].mxu0  ;;  %v2107_v51 = vpop.f32.mrb[21].mxu1 }
 0x124   : > { %v1945_v52 = vpop.f32.mrb[23].mxu0  ;;  %v790_v53 = vpop.f32.mrb[22].mxu1  ;;  %v1011_v15 = vor.u32 %v1010_v63, %v1006_v6 }
 0x125   : > { %v963_v54 = vld [vmem:[#allocation2 + $0x10] sm:$0x6]  ;;  %v876_v55 = vsel %vm845_vm6, %v864_v12, %v875_v46  ;;  %v840_v56 = vpack.c.bf16 %v827_v48, %v826_v47  ;;  %v683_v57 = vadd.f32 %v1943_v49, %v2530_v58  ;;  %v1946_v59 = vadd.f32 %v1945_v52, %v1944_v50  ;;  %v2108_v60 = vpop.f32.mrb[23].mxu1 }
 0x126   : > { %v964_v61 = vsel %vm2567_vm14, 0, %v963_v54  ;;  %934 = vst [vmem:[#allocation2 + $0x18] sm:$0xff] %v876_v55  ;;  %v2575_v62 = vld [vmem:[#allocation2 + $0x8] sm:$0xff]  ;;  %vm985_vm14 = vsmask.f32 6422 }
 0x127   : > { %965 = vst [vmem:[#allocation2 + $0x10] sm:$0x6] %v964_v61  ;;  %v878_v0 = vshrl.u32 %v840_v56, 16  ;;  %v788_v1 = vadd.f32 %v787_v43, %v683_v57  ;;  %v686_v3 = vadd.f32 %v1946_v59, %v2530_v58  ;;  %v1095_v5 = vrot.slane %v2575_v62, 1  ;;  %vm2648_vm15 = vmand %vm984_vm13, %vm985_vm14 }
 0x128   : > { %v1013_v7 = vshll.u32 %v2575_v62, 16  ;;  %v881_v9 = vshll.u32 %v840_v56, 16  ;;  %v1017_v40 = vshrl.u32 %v2575_v62, 16 }
 0x129   : > { %v2582_v8 = vrot.slane %v878_v0, 7  ;;  %v791_v10 = vadd.f32 %v790_v53, %v686_v3  ;;  %v1947_v11 = vpop.f32.mrb[24].mxu0  ;;  %v1096_v13 = vsel %vm382_vm2, %v1094_v4, %v1095_v5  ;;  %v828_v19 = vmax.f32 %v788_v1, 0.0 }
 0x12a   : > { %v1948_v12 = vpop.f32.mrb[25].mxu0  ;;  %v795_v14 = vpop.f32.mrb[24].mxu1  ;;  %v1015_v16 = vrot.slane %v1013_v7, 1  ;;  %2138 = vmatmul.mubr.bf16.vlgmr.msra.gmra.mrb[36].mxu1 %v1096_v13 }
 0x12b   : > { %v883_v18 = vor.u32 %v881_v9, %v2582_v8  ;;  %v829_v20 = vmax.f32 %v791_v10, 0.0  ;;  %v1949_v21 = vadd.f32 %v1948_v12, %v1947_v11  ;;  %v1950_v22 = vpop.f32.mrb[26].mxu0  ;;  %v2111_v23 = vpop.f32.mrb[25].mxu1  ;;  %2141 = vmatprep.mubr.msk.bf16.mxu1 %vm2250_vm0, %v2249_v2 }
 0x12c   : > { %v1951_v24 = vpop.f32.mrb[27].mxu0  ;;  %v1016_v25 = vsel %vm301_vm1, %v1011_v15, %v1015_v16  ;;  %v798_v26 = vpop.f32.mrb[26].mxu1  ;;  %v1019_v48 = vor.u32 %v1017_v40, %v1015_v16 }
 0x12d   : > { %v969_v27 = vld [vmem:[#allocation2 + $0x18] sm:$0xc]  ;;  %v884_v28 = vsel %vm845_vm6, %v872_v38, %v883_v18  ;;  %v841_v29 = vpack.c.bf16 %v829_v20, %v828_v19  ;;  %v691_v30 = vadd.f32 %v1949_v21, %v2530_v58  ;;  %v1952_v31 = vadd.f32 %v1951_v24, %v1950_v22  ;;  %1387 = vmatprep.mubr.bf16.mxu0 %v1016_v25  ;;  %v2112_v32 = vpop.f32.mrb[27].mxu1 }
 0x12e   : > { %v970_v33 = vsel %vm2587_vm5, 0, %v969_v27  ;;  %935 = vst [vmem:[#allocation2 + $0x20] sm:$0xff] %v884_v28  ;;  %1388 = vmatmul.mubr.bf16.vlgmr.msra.gmra.mrb[36].mxu0 %v2564_v37  ;;  %v2600_v34 = vld [vmem:[#allocation2 + $0x10] sm:$0xff]  ;;  %vm991_vm5 = vsmask.f32 7450 }
 0x12f   : > { %971 = vst [vmem:[#allocation2 + $0x18] sm:$0xc] %v970_v33  ;;  %v886_v35 = vshrl.u32 %v841_v29, 16  ;;  %v796_v36 = vadd.f32 %v795_v14, %v691_v30  ;;  %v694_v38 = vadd.f32 %v1952_v31, %v2530_v58  ;;  %v1097_v39 = vrot.slane %v2600_v34, 1  ;;  %vm992_vm8 = vmand %vm990_vm4, %vm991_vm5 }
 0x130   : > { %v1021_v41 = vshll.u32 %v2600_v34, 16  ;;  %v889_v43 = vshll.u32 %v841_v29, 16  ;;  %v1025_v11 = vshrl.u32 %v2600_v34, 16 }
 0x131   : > { %v2606_v42 = vrot.slane %v886_v35, 7  ;;  %v799_v44 = vadd.f32 %v798_v26, %v694_v38  ;;  %v1953_v37 = vpop.f32.mrb[28].mxu0  ;;  %v1098_v46 = vsel %vm382_vm2, %v1095_v5, %v1097_v39  ;;  %v830_v52 = vmax.f32 %v796_v36, 0.0 }
 0x132   : > { %v1954_v45 = vpop.f32.mrb[29].mxu0  ;;  %v803_v47 = vpop.f32.mrb[28].mxu1  ;;  %v1023_v49 = vrot.slane %v1021_v41, 1  ;;  %2142 = vmatmul.mubr.bf16.gmra.mrb[40].mxu1 %v1098_v46 }
 0x133   : > { %v891_v51 = vor.u32 %v889_v43, %v2606_v42  ;;  %v831_v53 = vmax.f32 %v799_v44, 0.0  ;;  %v1955_v54 = vadd.f32 %v1954_v45, %v1953_v37  ;;  %v1956_v55 = vpop.f32.mrb[30].mxu0  ;;  %v2115_v56 = vpop.f32.mrb[29].mxu1  ;;  %2145 = vmatprep.mubr.msk.bf16.mxu1 %vm2250_vm0, %v2249_v2 }
 0x134   : > { %v1957_v57 = vpop.f32.mrb[31].mxu0  ;;  %v1024_v59 = vsel %vm301_vm1, %v1019_v48, %v1023_v49  ;;  %v806_v60 = vpop.f32.mrb[30].mxu1  ;;  %v1027_v19 = vor.u32 %v1025_v11, %v1023_v49 }
 0x135   : > { %v975_v61 = vld [vmem:[#allocation2 + $0x20] sm:$0x18]  ;;  %v892_v63 = vsel %vm845_vm6, %v2582_v8, %v891_v51  ;;  %v842_v0 = vpack.c.bf16 %v831_v53, %v830_v52  ;;  %v699_v1 = vadd.f32 %v1955_v54, %v2530_v58  ;;  %v1958_v3 = vadd.f32 %v1957_v57, %v1956_v55  ;;  %1395 = vmatprep.mubr.bf16.mxu0 %v1024_v59  ;;  %v2116_v4 = vpop.f32.mrb[31].mxu1 }
 0x136   : > { %v976_v5 = vsel %vm2610_vm9, 0, %v975_v61  ;;  %936 = vst [vmem:[#allocation2 + $0x28] sm:$0xff] %v892_v63  ;;  %1396 = vmatmul.mubr.bf16.gmra.mrb[40].mxu0 %v2575_v62  ;;  %v2624_v6 = vld [vmem:[#allocation2 + $0x18] sm:$0xff]  ;;  %vm949_vm9 = vsmask.f32 7966 }
 0x137   : > { %977 = vst [vmem:[#allocation2 + $0x20] sm:$0x18] %v976_v5  ;;  %v894_v7 = vshrl.u32 %v842_v0, 16  ;;  %v804_v9 = vadd.f32 %v803_v47, %v699_v1  ;;  %v702_v8 = vadd.f32 %v1958_v3, %v2530_v58  ;;  %v1099_v10 = vrot.slane %v2624_v6, 1  ;;  %vm950_vm10 = vmand %vm948_vm3, %vm949_vm9 }
 0x138   : > { %v1029_v12 = vshll.u32 %v2624_v6, 16  ;;  %v897_v14 = vshll.u32 %v842_v0, 16  ;;  %v1033_v37 = vshrl.u32 %v2624_v6, 16 }
 0x139   : > { %v896_v13 = vrot.slane %v894_v7, 7  ;;  %v807_v15 = vadd.f32 %v806_v60, %v702_v8  ;;  %v1959_v16 = vpop.f32.mrb[32].mxu0  ;;  %v1100_v17 = vsel %vm382_vm2, %v1097_v39, %v1099_v10  ;;  %v832_v23 = vmax.f32 %v804_v9, 0.0 }
 0x13a   : > { %v1960_v62 = vpop.f32.mrb[33].mxu0  ;;  %v811_v18 = vpop.f32.mrb[32].mxu1  ;;  %v1031_v20 = vrot.slane %v1029_v12, 1  ;;  %2146 = vmatmul.mubr.bf16.gmra.mrb[44].mxu1 %v1100_v17 }
 0x13b   : > { %v899_v22 = vor.u32 %v897_v14, %v896_v13  ;;  %v833_v24 = vmax.f32 %v807_v15, 0.0  ;;  %v1961_v25 = vadd.f32 %v1960_v62, %v1959_v16  ;;  %v1962_v26 = vpop.f32.mrb[34].mxu0  ;;  %v2119_v27 = vpop.f32.mrb[33].mxu1  ;;  %2149 = vmatprep.mubr.msk.bf16.mxu1 %vm2250_vm0, %v2249_v2 }
 0x13c   : > { %v1963_v28 = vpop.f32.mrb[35].mxu0  ;;  %v1032_v29 = vsel %vm301_vm1, %v1027_v19, %v1031_v20  ;;  %v814_v30 = vpop.f32.mrb[34].mxu1  ;;  %v1035_v50 = vor.u32 %v1033_v37, %v1031_v20  ;;  %v1887_v37 = vld [vmem:[%s2364_s16 + $0x8] sm:$0xff]  }
 0x13d   : > { %v981_v31 = vld [vmem:[#allocation2 + $0x28] sm:$0x30]  ;;  %v900_v32 = vsel %vm845_vm6, %v2606_v42, %v899_v22  ;;  %v843_v33 = vpack.c.bf16 %v833_v24, %v832_v23  ;;  %v707_v35 = vadd.f32 %v1961_v25, %v2530_v58  ;;  %v1964_v36 = vadd.f32 %v1963_v28, %v1962_v26  ;;  %1403 = vmatprep.mubr.bf16.mxu0 %v1032_v29  ;;  %v2120_v38 = vpop.f32.mrb[35].mxu1 }
 0x13e   : > { %v982_v39 = vsel %vm2632_vm12, 0, %v981_v31  ;;  %937 = vst [vmem:[#allocation2 + $0x30] sm:$0xff] %v900_v32  ;;  %1404 = vmatmul.mubr.bf16.gmra.mrb[44].mxu0 %v2600_v34  ;;  %v1000_v40 = vld [vmem:[#allocation2 + $0x20] sm:$0xff] }
 0x13f   : > { %983 = vst [vmem:[#allocation2 + $0x28] sm:$0x30] %v982_v39  ;;  %v902_v41 = vshrl.u32 %v843_v33, 16  ;;  %v812_v43 = vadd.f32 %v811_v18, %v707_v35  ;;  %v710_v44 = vadd.f32 %v1964_v36, %v2530_v58  ;;  %v1101_v42 = vrot.slane %v1000_v40, 1 }
 0x140   : > { %v1037_v45 = vshll.u32 %v1000_v40, 16  ;;  %v905_v47 = vshll.u32 %v843_v33, 16  ;;  %v1041_v61 = vshrl.u32 %v1000_v40, 16 }
 0x141   : > { %v904_v46 = vrot.slane %v902_v41, 7  ;;  %v815_v48 = vadd.f32 %v814_v30, %v710_v44  ;;  %v1102_v49 = vsel %vm382_vm2, %v1099_v10, %v1101_v42  ;;  %v834_v53 = vmax.f32 %v812_v43, 0.0 }
 0x142   : > { %v1039_v51 = vrot.slane %v1037_v45, 1  ;;  %2150 = vmatmul.mubr.bf16.gmra.mrb[48].mxu1 %v1102_v49 }
 0x143   : > { %v907_v52 = vor.u32 %v905_v47, %v904_v46  ;;  %v835_v54 = vmax.f32 %v815_v48, 0.0  ;;  %2153 = vmatprep.mubr.msk.bf16.mxu1 %vm2250_vm0, %v2249_v2 }
 0x144   : > { %v1040_v58 = vsel %vm301_vm1, %v1035_v50, %v1039_v51  ;;  %v1043_v3 = vor.u32 %v1041_v61, %v1039_v51  ;;  %v1857_v50 = vunpack.c.l.bf16 %v1887_v37  ;;  %v1888_v61 = vld [vmem:[%s2364_s16 + $0x10] sm:$0xff]  }
 0x145   : > { %v987_v55 = vld [vmem:[#allocation2 + $0x30] sm:$0x60]  ;;  %v908_v56 = vsel %vm845_vm6, %v896_v13, %v907_v52  ;;  %v844_v57 = vpack.c.bf16 %v835_v54, %v834_v53  ;;  %1411 = vmatprep.mubr.bf16.mxu0 %v1040_v58 }
 0x146   : > { %v988_v59 = vsel %vm2648_vm15, 0, %v987_v55  ;;  %938 = vst [vmem:[#allocation2 + $0x38] sm:$0xff] %v908_v56  ;;  %1412 = vmatmul.mubr.bf16.gmra.mrb[48].mxu0 %v2624_v6  ;;  %v1001_v60 = vld [vmem:[#allocation2 + $0x28] sm:$0xff]  ;;  %v940_v6 = vld [vmem:[#allocation2 + $0x40] sm:$0xff] }
 0x147   : > { %989 = vst [vmem:[#allocation2 + $0x30] sm:$0x60] %v988_v59  ;;  %v910_v63 = vshrl.u32 %v844_v57, 16  ;;  %v1103_v0 = vrot.slane %v1001_v60, 1  ;;  %v1045_v1 = vshll.u32 %v1001_v60, 16  ;;  %v913_v5 = vshll.u32 %v844_v57, 16 }
 0x148   : > { %v1049_v62 = vshrl.u32 %v1001_v60, 16  ;;  %v1587_v57 = vrot.slane %v1857_v50, 1 }
 0x149   : > { %v912_v4 = vrot.slane %v910_v63, 7  ;;  %v1104_v7 = vsel %vm382_vm2, %v1101_v42, %v1103_v0  ;;  %v1047_v9 = vrot.slane %v1045_v1, 1  ;;  %v1852_v42 = vld [vmem:[%s2364_s16] sm:$0xff]   ;;  %v1858_v1 = vunpack.c.h.bf16 %v1887_v37 }
 0x14a   : > { %2154 = vmatmul.mubr.bf16.gmra.mrb[52].mxu1 %v1104_v7  ;;  %v1854_v47 = vunpack.c.h.bf16 %v1852_v42 }
 0x14b   : > { %v915_v8 = vor.u32 %v913_v5, %v912_v4  ;;  %v1048_v10 = vsel %vm301_vm1, %v1043_v3, %v1047_v9  ;;  %2157 = vmatprep.mubr.msk.bf16.mxu1 %vm2250_vm0, %v2249_v2  ;;  %v1051_v19 = vor.u32 %v1049_v62, %v1047_v9 }
 0x14c   : > { %1419 = vmatprep.mubr.bf16.mxu0 %v1048_v10  ;;  %v1585_v54 = vrot.slane %v1854_v47, 1 }
 0x14d   : > { %v993_v11 = vld [vmem:[#allocation2 + $0x38] sm:$0xc0]  ;;  %v916_v12 = vsel %vm845_vm6, %v904_v46, %v915_v8  ;;  %v1853_v46 = vunpack.c.l.bf16 %v1852_v42  ;;  %v1861_v8 = vunpack.c.l.bf16 %v1888_v61 }
 0x14e   : > { %v994_v13 = vsel %vm992_vm8, 0, %v993_v11  ;;  %v941_v14 = vsel %vm939_vm7, %v916_v12, %v940_v6  ;;  %1420 = vmatmul.mubr.bf16.gmra.mrb[52].mxu0 %v1000_v40  ;;  %v1002_v15 = vld [vmem:[#allocation2 + $0x30] sm:$0xff]  ;;  %v1588_v7 = vsel %vm382_vm2, %v1585_v54, %v1587_v57 }
 0x14f   : > { %995 = vst [vmem:[#allocation2 + $0x38] sm:$0xc0] %v994_v13  ;;  %942 = vst [vmem:[#allocation2 + $0x40] sm:$0xff] %v941_v14  ;;  %v1105_v16 = vrot.slane %v1002_v15, 1  ;;  %v1053_v17 = vshll.u32 %v1002_v15, 16  ;;  %v1057_v26 = vshrl.u32 %v1002_v15, 16 }
 0x150   : > { %v1584_v53 = vrot.slane %v1853_v46, 1  ;;  %v1589_v14 = vrot.slane %v1858_v1, 1 }
 0x151   : > { %v1106_v18 = vsel %vm382_vm2, %v1103_v0, %v1105_v16  ;;  %v1055_v20 = vrot.slane %v1053_v17, 1 }
 0x152   : > { %2158 = vmatmul.mubr.bf16.gmra.mrb[56].mxu1 %v1106_v18  ;;  %v1586_v63 = vsel %vm382_vm2, %v1584_v53, %v1585_v54 }
 0x153   : > { %v1056_v21 = vsel %vm301_vm1, %v1051_v19, %v1055_v20  ;;  %2161 = vmatprep.mubr.msk.bf16.mxu1 %vm2250_vm0, %v2249_v2  ;;  %v1059_v29 = vor.u32 %v1057_v26, %v1055_v20  ;;  %v1591_v19 = vrot.slane %v1861_v8, 1  ;;  %v1862_v26 = vunpack.c.h.bf16 %v1888_v61 }
 0x154   : > { %1427 = vmatprep.mubr.bf16.mxu0 %v1056_v21 }
 0x156   : > { %v951_v22 = vld [vmem:[#allocation2 + $0x40] sm:$0x80]  ;;  %1428 = vmatmul.mubr.bf16.gmra.mrb[56].mxu0 %v1001_v60  ;;  %v1003_v23 = vld [vmem:[#allocation2 + $0x38] sm:$0xff] }
 0x157   : > { %v952_v24 = vsel %vm950_vm10, 0, %v951_v22  ;;  %v1107_v25 = vrot.slane %v1003_v23, 1  ;;  %v1061_v27 = vshll.u32 %v1003_v23, 16  ;;  %v1065_v35 = vshrl.u32 %v1003_v23, 16 }
 0x158   : > { %953 = vst [vmem:[#allocation2 + $0x40] sm:$0x80] %v952_v24  ;;  %v1590_v24 = vsel %vm382_vm2, %v1587_v57, %v1589_v14 }
 0x159   : > { %v1108_v28 = vsel %vm382_vm2, %v1105_v16, %v1107_v25  ;;  %v1063_v30 = vrot.slane %v1061_v27, 1 }
 0x15a   : > { %2162 = vmatmul.mubr.bf16.gmra.mrb[60].mxu1 %v1108_v28 }
 0x15b   : > { %v1064_v31 = vsel %vm301_vm1, %v1059_v29, %v1063_v30  ;;  %2165 = vmatprep.mubr.msk.bf16.mxu1 %vm2250_vm0, %v2249_v2  ;;  %v1067_v39 = vor.u32 %v1065_v35, %v1063_v30  ;;  %v1592_v30 = vsel %vm382_vm2, %v1589_v14, %v1591_v19 }
 0x15c   : > { %1435 = vmatprep.mubr.bf16.mxu0 %v1064_v31 }
 0x15e   : > { %1436 = vmatmul.mubr.bf16.gmra.mrb[60].mxu0 %v1002_v15 }
 0x15f   : > { %v1004_v32 = vld [vmem:[#allocation2 + $0x40] sm:$0xff] }
 0x160   : > { %v1109_v33 = vrot.slane %v1004_v32, 1  ;;  %v1069_v36 = vshll.u32 %v1004_v32, 16  ;;  %v1073_v41 = vshrl.u32 %v1004_v32, 16 }
 0x162   : > { %v1110_v38 = vsel %vm382_vm2, %v1107_v25, %v1109_v33  ;;  %v1071_v40 = vrot.slane %v1069_v36, 1 }
 0x163   : > { %2166 = vmatmul.mubr.bf16.gmra.mrb[64].mxu1 %v1110_v38 }
 0x164   : > { %v1072_v43 = vsel %vm301_vm1, %v1067_v39, %v1071_v40  ;;  %v1075_v44 = vor.u32 %v1073_v41, %v1071_v40  ;;  %2169 = vmatprep.mubr.msk.bf16.mxu1 %vm2250_vm0, %v2249_v2  ;;  %v2684_v2 = vld [vmem:[%s2762_s4] ss:$0 sm:$0xff]  ;;  %v1593_v40 = vrot.slane %v1862_v26, 1 }
 0x165   : > { %1443 = vmatprep.mubr.bf16.mxu0 %v1072_v43 }
 0x166   : > { %1444 = vmatmul.mubr.bf16.gmra.mrb[64].mxu0 %v1003_v23  ;;  %v1889_v23 = vld [vmem:[%s2364_s16 + $0x18] sm:$0xff]   ;;  %v1594_v50 = vsel %vm382_vm2, %v1591_v19, %v1593_v40 }
 0x167   : > { %1451 = vmatprep.mubr.bf16.mxu0 %v1075_v44 }
 0x16b   : > { %2170 = vmatmul.mubr.bf16.gmra.mrb[68].mxu1 %v1109_v33 }
 0x16e   : > { %1452 = vmatmul.mubr.bf16.gmra.mrb[68].mxu0 %v1004_v32  ;;  %v1865_v32 = vunpack.c.l.bf16 %v1889_v23 }
 0x1fd   : > { %v1494_v45 = vpop.f32.mrb[36].mxu1 }
 0x1fe   : > { %v2139_v48 = vpop.f32.mrb[37].mxu1 }
 0x1ff   : > { %v1497_v49 = vpop.f32.mrb[38].mxu1 }
 0x200   : > { %v2140_v34 = vpop.f32.mrb[39].mxu1 }
 0x201   : > { %v1998_v51 = vpop.f32.mrb[36].mxu0  ;;  %v1866_v34 = vunpack.c.h.bf16 %v1889_v23 }
 0x202   : > { %v1999_v52 = vpop.f32.mrb[37].mxu0 }
 0x203   : > { %v2000_v58 = vadd.f32 %v1999_v52, %v1998_v51  ;;  %v2001_v55 = vpop.f32.mrb[38].mxu0 }
 0x204   : > { %v2002_v56 = vpop.f32.mrb[39].mxu0 }
 0x205   : > { %v1390_v59 = vadd.f32 %v2000_v58, %v2684_v2  ;;  %v2003_v60 = vadd.f32 %v2002_v56, %v2001_v55  ;;  %v1502_v0 = vpop.f32.mrb[40].mxu1 }
 0x206   : > { %v2143_v5 = vpop.f32.mrb[41].mxu1 }
 0x207   : > { %v1495_v3 = vadd.f32 %v1494_v45, %v1390_v59  ;;  %v1393_v4 = vadd.f32 %v2003_v60, %v2684_v2  ;;  %v1505_v9 = vpop.f32.mrb[42].mxu1  ;;  %v1595_v45 = vrot.slane %v1865_v32, 1 }
 0x208   : > { %v2144_v12 = vpop.f32.mrb[43].mxu1 }
 0x209   : > { %v1637_v6 = vadd.f32 %v1586_v63, %v1495_v3  ;;  %v1498_v10 = vadd.f32 %v1497_v49, %v1393_v4  ;;  %v2004_v11 = vpop.f32.mrb[40].mxu0  ;;  %v1890_v49 = vld [vmem:[%s2364_s16 + $0x20] sm:$0xff]   ;;  %v1596_v58 = vsel %vm382_vm2, %v1593_v40, %v1595_v45 }
 0x20a   : > { %v2005_v13 = vpop.f32.mrb[41].mxu0  ;;  %v1869_v56 = vunpack.c.l.bf16 %v1890_v49  ;;  %v1870_v14 = vunpack.c.h.bf16 %v1890_v49 }
 0x20b   : > { %v1655_v15 = vmax.f32 %v1637_v6, 0.0  ;;  %v1638_v16 = vadd.f32 %v1588_v7, %v1498_v10  ;;  %v2006_v62 = vadd.f32 %v2005_v13, %v2004_v11  ;;  %v2007_v17 = vpop.f32.mrb[42].mxu0  ;;  %v1891_v11 = vld [vmem:[%s2364_s16 + $0x28] sm:$0xff]  }
 0x20c   : > { %v2008_v18 = vpop.f32.mrb[43].mxu0  ;;  %v1873_v19 = vunpack.c.l.bf16 %v1891_v11  ;;  %v1874_v40 = vunpack.c.h.bf16 %v1891_v11 }
 0x20d   : > { %1673 = vst [vmem:[%s2694_s13] sm:$0xff] %v1655_v15  ;;  %v1656_v20 = vmax.f32 %v1638_v16, 0.0  ;;  %v1398_v21 = vadd.f32 %v2006_v62, %v2684_v2  ;;  %v2009_v22 = vadd.f32 %v2008_v18, %v2007_v17  ;;  %v1510_v25 = vpop.f32.mrb[44].mxu1 }
 0x20e   : > { %v2147_v29 = vpop.f32.mrb[45].mxu1 }
 0x20f   : > { %1674 = vst [vmem:[%s2694_s13 + $0x8] sm:$0xff] %v1656_v20  ;;  %v1503_v27 = vadd.f32 %v1502_v0, %v1398_v21  ;;  %v1401_v28 = vadd.f32 %v2009_v22, %v2684_v2  ;;  %v1513_v31 = vpop.f32.mrb[46].mxu1  ;;  %v1597_v0 = vrot.slane %v1866_v34, 1 }
 0x210   : > { %v2148_v38 = vpop.f32.mrb[47].mxu1 }
 0x211   : > { %v1639_v33 = vadd.f32 %v1590_v24, %v1503_v27  ;;  %v1506_v35 = vadd.f32 %v1505_v9, %v1401_v28  ;;  %v2010_v36 = vpop.f32.mrb[44].mxu0  ;;  %v1599_v9 = vrot.slane %v1869_v56, 1  ;;  %v1598_v12 = vsel %vm382_vm2, %v1595_v45, %v1597_v0 }
 0x212   : > { %v2011_v39 = vpop.f32.mrb[45].mxu0 }
 0x213   : > { %v1657_v41 = vmax.f32 %v1639_v33, 0.0  ;;  %v1640_v43 = vadd.f32 %v1592_v30, %v1506_v35  ;;  %v2012_v44 = vadd.f32 %v2011_v39, %v2010_v36  ;;  %v2013_v42 = vpop.f32.mrb[46].mxu0  ;;  %v1600_v17 = vsel %vm382_vm2, %v1597_v0, %v1599_v9  ;;  %v1892_v36 = vld [vmem:[%s2364_s16 + $0x30] sm:$0xff]  }
 0x214   : > { %v2014_v37 = vpop.f32.mrb[47].mxu0  ;;  %v1877_v45 = vunpack.c.l.bf16 %v1892_v36  ;;  %v1878_v0 = vunpack.c.h.bf16 %v1892_v36 }
 0x215   : > { %1828 = vst [vmem:[%s2694_s13 + $0xe] sm:$0xfc] %v1657_v41  ;;  %v1658_v46 = vmax.f32 %v1640_v43, 0.0  ;;  %v1406_v47 = vadd.f32 %v2012_v44, %v2684_v2  ;;  %v2015_v48 = vadd.f32 %v2014_v37, %v2013_v42  ;;  %v1518_v51 = vpop.f32.mrb[48].mxu1 }
 0x216   : > { %v2151_v54 = vpop.f32.mrb[49].mxu1 }
 0x217   : > { %1829 = vst [vmem:[%s2694_s13 + $0x16] sm:$0xff] %v1658_v46  ;;  %v1511_v52 = vadd.f32 %v1510_v25, %v1406_v47  ;;  %v1409_v53 = vadd.f32 %v2015_v48, %v2684_v2  ;;  %v1521_v55 = vpop.f32.mrb[50].mxu1  ;;  %v1601_v25 = vrot.slane %v1870_v14, 1 }
 0x218   : > { %v2152_v61 = vpop.f32.mrb[51].mxu1 }
 0x219   : > { %v1641_v57 = vadd.f32 %v1594_v50, %v1511_v52  ;;  %v1514_v59 = vadd.f32 %v1513_v31, %v1409_v53  ;;  %v2016_v60 = vpop.f32.mrb[48].mxu0  ;;  %v1603_v31 = vrot.slane %v1873_v19, 1  ;;  %v1602_v38 = vsel %vm382_vm2, %v1599_v9, %v1601_v25 }
 0x21a   : > { %v2017_v63 = vpop.f32.mrb[49].mxu0 }
 0x21b   : > { %v1659_v1 = vmax.f32 %v1641_v57, 0.0  ;;  %v1642_v3 = vadd.f32 %v1596_v58, %v1514_v59  ;;  %v2018_v4 = vadd.f32 %v2017_v63, %v2016_v60  ;;  %v2019_v5 = vpop.f32.mrb[50].mxu0  ;;  %v1604_v42 = vsel %vm382_vm2, %v1601_v25, %v1603_v31  ;;  %v1893_v60 = vld [vmem:[%s2364_s16 + $0x38] sm:$0xff]  }
 0x21c   : > { %v2020_v7 = vpop.f32.mrb[51].mxu0  ;;  %v1881_v9 = vunpack.c.l.bf16 %v1893_v60  ;;  %v1882_v25 = vunpack.c.h.bf16 %v1893_v60 }
 0x21d   : > { %1830 = vst [vmem:[%s2694_s13 + $0x1e] sm:$0x3] %v1659_v1  ;;  %1831 = vst [vmem:[%s2694_s13 + $0x1c] sm:$0xf0] %v1659_v1  ;;  %v1660_v8 = vmax.f32 %v1642_v3, 0.0  ;;  %v1414_v6 = vadd.f32 %v2018_v4, %v2684_v2  ;;  %v2021_v10 = vadd.f32 %v2020_v7, %v2019_v5  ;;  %v1526_v13 = vpop.f32.mrb[52].mxu1 }
 0x21e   : > { %v2155_v62 = vpop.f32.mrb[53].mxu1 }
 0x21f   : > { %1832 = vst [vmem:[%s2694_s13 + $0x24] sm:$0xff] %v1660_v8  ;;  %v1519_v15 = vadd.f32 %v1518_v51, %v1414_v6  ;;  %v1417_v16 = vadd.f32 %v2021_v10, %v2684_v2  ;;  %v1529_v18 = vpop.f32.mrb[54].mxu1  ;;  %v1605_v51 = vrot.slane %v1874_v40, 1 }
 0x220   : > { %v2156_v23 = vpop.f32.mrb[55].mxu1 }
 0x221   : > { %v1643_v20 = vadd.f32 %v1598_v12, %v1519_v15  ;;  %v1522_v21 = vadd.f32 %v1521_v55, %v1417_v16  ;;  %v2022_v22 = vpop.f32.mrb[52].mxu0  ;;  %v1607_v55 = vrot.slane %v1877_v45, 1  ;;  %v1606_v61 = vsel %vm382_vm2, %v1603_v31, %v1605_v51 }
 0x222   : > { %v2023_v24 = vpop.f32.mrb[53].mxu0 }
 0x223   : > { %v1661_v26 = vmax.f32 %v1643_v20, 0.0  ;;  %v1644_v27 = vadd.f32 %v1600_v17, %v1522_v21  ;;  %v2024_v28 = vadd.f32 %v2023_v24, %v2022_v22  ;;  %v2025_v29 = vpop.f32.mrb[54].mxu0  ;;  %v1608_v5 = vsel %vm382_vm2, %v1605_v51, %v1607_v55  ;;  %v1894_v22 = vld [vmem:[%s2364_s16 + $0x40] sm:$0xff]  }
 0x224   : > { %v2026_v30 = vpop.f32.mrb[55].mxu0  ;;  %v1885_v31 = vunpack.c.l.bf16 %v1894_v22 }
 0x225   : > { %1833 = vst [vmem:[%s2694_s13 + $0x2c] sm:$0xf] %v1661_v26  ;;  %1834 = vst [vmem:[%s2694_s13 + $0x2a] sm:$0xc0] %v1661_v26  ;;  %v1662_v32 = vmax.f32 %v1644_v27, 0.0  ;;  %v1422_v33 = vadd.f32 %v2024_v28, %v2684_v2  ;;  %v2027_v35 = vadd.f32 %v2026_v30, %v2025_v29  ;;  %v1534_v39 = vpop.f32.mrb[56].mxu1 }
 0x226   : > { %v2159_v44 = vpop.f32.mrb[57].mxu1 }
 0x227   : > { %1835 = vst [vmem:[%s2694_s13 + $0x32] sm:$0xff] %v1662_v32  ;;  %v1527_v41 = vadd.f32 %v1526_v13, %v1422_v33  ;;  %v1425_v43 = vadd.f32 %v2027_v35, %v2684_v2  ;;  %v1537_v37 = vpop.f32.mrb[58].mxu1  ;;  %v1609_v13 = vrot.slane %v1878_v0, 1 }
 0x228   : > { %v2160_v49 = vpop.f32.mrb[59].mxu1 }
 0x229   : > { %v1645_v46 = vadd.f32 %v1602_v38, %v1527_v41  ;;  %v1530_v47 = vadd.f32 %v1529_v18, %v1425_v43  ;;  %v2028_v48 = vpop.f32.mrb[56].mxu0  ;;  %v1611_v18 = vrot.slane %v1881_v9, 1  ;;  %v1610_v23 = vsel %vm382_vm2, %v1607_v55, %v1609_v13 }
 0x22a   : > { %v2029_v50 = vpop.f32.mrb[57].mxu0 }
 0x22b   : > { %v1663_v34 = vmax.f32 %v1645_v46, 0.0  ;;  %v1646_v52 = vadd.f32 %v1604_v42, %v1530_v47  ;;  %v2030_v53 = vadd.f32 %v2029_v50, %v2028_v48  ;;  %v2031_v54 = vpop.f32.mrb[58].mxu0  ;;  %v1612_v29 = vsel %vm382_vm2, %v1609_v13, %v1611_v18 }
 0x22c   : > { %v2032_v58 = vpop.f32.mrb[59].mxu0  ;;  %v1886_v50 = vunpack.c.h.bf16 %v1894_v22 }
 0x22d   : > { %1836 = vst [vmem:[%s2694_s13 + $0x3a] sm:$0x3f] %v1663_v34  ;;  %v1664_v56 = vmax.f32 %v1646_v52, 0.0  ;;  %v1430_v57 = vadd.f32 %v2030_v53, %v2684_v2  ;;  %v2033_v59 = vadd.f32 %v2032_v58, %v2031_v54  ;;  %v1542_v63 = vpop.f32.mrb[60].mxu1 }
 0x22e   : > { %v2163_v4 = vpop.f32.mrb[61].mxu1  ;;  %v1617_v60 = vrot.slane %v1886_v50, 1 }
 0x22f   : > { %1837 = vst [vmem:[%s2694_s13 + $0x40] sm:$0xff] %v1664_v56  ;;  %v1535_v1 = vadd.f32 %v1534_v39, %v1430_v57  ;;  %v1433_v3 = vadd.f32 %v2033_v59, %v2684_v2  ;;  %v1545_v7 = vpop.f32.mrb[62].mxu1  ;;  %v1613_v39 = vrot.slane %v1882_v25, 1 }
 0x230   : > { %v2164_v11 = vpop.f32.mrb[63].mxu1 }
 0x231   : > { %v1647_v8 = vadd.f32 %v1606_v61, %v1535_v1  ;;  %v1538_v6 = vadd.f32 %v1537_v37, %v1433_v3  ;;  %v2034_v10 = vpop.f32.mrb[60].mxu0  ;;  %v1615_v37 = vrot.slane %v1885_v31, 1  ;;  %v1614_v48 = vsel %vm382_vm2, %v1611_v18, %v1613_v39 }
 0x232   : > { %v2035_v12 = vpop.f32.mrb[61].mxu0 }
 0x233   : > { %v1665_v14 = vmax.f32 %v1647_v8, 0.0  ;;  %v1648_v15 = vadd.f32 %v1608_v5, %v1538_v6  ;;  %v2036_v16 = vadd.f32 %v2035_v12, %v2034_v10  ;;  %v2037_v62 = vpop.f32.mrb[62].mxu0  ;;  %v1616_v53 = vsel %vm382_vm2, %v1613_v39, %v1615_v37 }
 0x234   : > { %v2038_v17 = vpop.f32.mrb[63].mxu0  ;;  %v1618_v9 = vsel %vm382_vm2, %v1615_v37, %v1617_v60 }
 0x235   : > { %1838 = vst [vmem:[%s2694_s13 + $0x48] sm:$0xff] %v1665_v14  ;;  %v1666_v19 = vmax.f32 %v1648_v15, 0.0  ;;  %v1438_v20 = vadd.f32 %v2036_v16, %v2684_v2  ;;  %v2039_v21 = vadd.f32 %v2038_v17, %v2037_v62 }
 0x236   : > { %v1550_v24 = vpop.f32.mrb[64].mxu1 }
 0x237   : > { %1839 = vst [vmem:[%s2694_s13 + $0x4e] sm:$0xfc] %v1666_v19  ;;  %v1543_v26 = vadd.f32 %v1542_v63, %v1438_v20  ;;  %v1441_v27 = vadd.f32 %v2039_v21, %v2684_v2  ;;  %v2167_v28 = vpop.f32.mrb[65].mxu1 }
 0x238   : > { %v1553_v30 = vpop.f32.mrb[66].mxu1 }
 0x239   : > { %v1649_v32 = vadd.f32 %v1610_v23, %v1543_v26  ;;  %v1546_v33 = vadd.f32 %v1545_v7, %v1441_v27  ;;  %v2040_v35 = vpop.f32.mrb[64].mxu0  ;;  %v2168_v36 = vpop.f32.mrb[67].mxu1 }
 0x23a   : > { %v2041_v38 = vpop.f32.mrb[65].mxu0 }
 0x23b   : > { %v1667_v40 = vmax.f32 %v1649_v32, 0.0  ;;  %v1650_v41 = vadd.f32 %v1612_v29, %v1546_v33  ;;  %v2042_v43 = vadd.f32 %v2041_v38, %v2040_v35  ;;  %v2043_v44 = vpop.f32.mrb[66].mxu0 }
 0x23c   : > { %v2044_v42 = vpop.f32.mrb[67].mxu0 }
 0x23d   : > { %1840 = vst [vmem:[%s2694_s13 + $0x56] sm:$0xff] %v1667_v40  ;;  %v1668_v45 = vmax.f32 %v1650_v41, 0.0  ;;  %v1446_v46 = vadd.f32 %v2042_v43, %v2684_v2  ;;  %v2045_v47 = vadd.f32 %v2044_v42, %v2043_v44 }
 0x23e   : > { %v1558_v49 = vpop.f32.mrb[68].mxu1 }
 0x23f   : > { %1841 = vst [vmem:[%s2694_s13 + $0x5e] sm:$0x3] %v1668_v45  ;;  %1842 = vst [vmem:[%s2694_s13 + $0x5c] sm:$0xf0] %v1668_v45  ;;  %v1551_v51 = vadd.f32 %v1550_v24, %v1446_v46  ;;  %v1449_v34 = vadd.f32 %v2045_v47, %v2684_v2  ;;  %v2171_v52 = vpop.f32.mrb[69].mxu1 }
 0x240   : > { %v1561_v54 = vpop.f32.mrb[70].mxu1 }
 0x241   : > { %v1651_v58 = vadd.f32 %v1614_v48, %v1551_v51  ;;  %v1554_v55 = vadd.f32 %v1553_v30, %v1449_v34  ;;  %v2046_v56 = vpop.f32.mrb[68].mxu0  ;;  %v2172_v57 = vpop.f32.mrb[71].mxu1 }
 0x242   : > { %v2047_v59 = vpop.f32.mrb[69].mxu0 }
 0x243   : > { %v1669_v61 = vmax.f32 %v1651_v58, 0.0  ;;  %v1652_v63 = vadd.f32 %v1616_v53, %v1554_v55  ;;  %v2048_v0 = vadd.f32 %v2047_v59, %v2046_v56  ;;  %v2049_v1 = vpop.f32.mrb[70].mxu0 }
 0x244   : > { %v2050_v3 = vpop.f32.mrb[71].mxu0 }
 0x245   : > { %1843 = vst [vmem:[%s2694_s13 + $0x64] sm:$0xff] %v1669_v61  ;;  %v1670_v4 = vmax.f32 %v1652_v63, 0.0  ;;  %v1454_v5 = vadd.f32 %v2048_v0, %v2684_v2  ;;  %v2051_v7 = vadd.f32 %v2050_v3, %v2049_v1 }
 0x247   : > { %1844 = vst [vmem:[%s2694_s13 + $0x6c] sm:$0xf] %v1670_v4  ;;  %1845 = vst [vmem:[%s2694_s13 + $0x6a] sm:$0xc0] %v1670_v4  ;;  %v1559_v8 = vadd.f32 %v1558_v49, %v1454_v5  ;;  %v1457_v6 = vadd.f32 %v2051_v7, %v2684_v2 }
 0x249   : > { %v1653_v10 = vadd.f32 %v1618_v9, %v1559_v8  ;;  %v1562_v11 = vadd.f32 %v1561_v54, %v1457_v6 }
 0x24b   : > { %v1671_v12 = vmax.f32 %v1653_v10, 0.0  ;;  %v1654_v13 = vadd.f32 %v1617_v60, %v1562_v11 }
 0x24d   : > { %1846 = vst [vmem:[%s2694_s13 + $0x72] sm:$0xff] %v1671_v12  ;;  %v1672_v14 = vmax.f32 %v1654_v13, 0.0 }
 0x24f   : > { %1847 = vst [vmem:[%s2694_s13 + $0x7a] sm:$0x3f] %v1672_v14 }
 0x250 PF: > { %s15_s18 = sadd.s32 1, %s2247_s18  }
 0x251   : > { %p12_p5 = scmp.ge.s32.totalorder %s15_s18, 4  }
 0x253   :  { %14 = sbr.rel (!%p12_p5) target bundleno = 1 (0x1), region = 77 }

</bundles_post_ra>
